<compile_context>
chip_gen: v5e
topology: v5e:2x2
jax: 0.10.0
libtpu: 0.0.40
codegen_flags: <defaults>
</compile_context>

<pallas_src>
import functools

import jax
import jax.numpy as jnp
from jax.experimental import pallas as pl
from jax.experimental.pallas import tpu as pltpu


NEG_INF = float("-inf")
PAD_BIAS = -1e30      # logit bias for padded vocab lanes (exp underflows to 0)
ATT_BIAS = -1e30      # additive mask for cross-batch attention columns
META_LANES = 128      # lane-dense packed output: [pred, token, score, 0...]


def _round_up(x, m):
    return (x + m - 1) // m * m


# --------------------------------------------------------------------------
# Fused kernel: the whole beam-search decode loop (grid over time).
# --------------------------------------------------------------------------
def fused_decode_kernel(emb_ref, w_x_ref, b_x_ref, w_c_ref, b_c_ref,
                        w_o_ref, b_o_ref, enc_km_ref, enc_vm_ref, bias_ref,
                        h0_ref, c0_ref, seq0_ref, tok0_ref,
                        logp_ref, meta_ref,
                        h_scr, c_scr, seq_scr, tok_scr,
                        *, B, k, V_pad, EOS):
    t = pl.program_id(0)

    @pl.when(t == 0)
    def _init():
        h_scr[...] = h0_ref[...]
        c_scr[...] = c0_ref[...]
        seq_scr[...] = seq0_ref[...]
        tok_scr[...] = tok0_ref[...]

    Bk_pad, H = h_scr.shape
    neg = jnp.float32(NEG_INF)
    bf16 = jnp.bfloat16

    h = h_scr[...]                          # (Bk_pad, H)  f32
    c = c_scr[...]                          # (Bk_pad, H)  f32
    tok = tok_scr[...]                      # (Bk_pad, 1)  int32
    seq = seq_scr[...]                      # (Bk_pad, 1)  f32

    rows_col = jax.lax.broadcasted_iota(jnp.int32, (Bk_pad, 1), 0)
    beams_row = jax.lax.broadcasted_iota(jnp.int32, (1, Bk_pad), 1)
    vcol_i = jax.lax.broadcasted_iota(jnp.int32, (1, V_pad), 1)      # (1, V_pad)
    vcol_f = vcol_i.astype(jnp.float32)

    # --- embedding lookup as one-hot matmul on the MXU (bf16 operands) ---
    onehot = (vcol_i == tok).astype(bf16)                            # (Bk_pad, V_pad)
    emb = jnp.dot(onehot, emb_ref[...], preferred_element_type=jnp.float32)  # (Bk_pad, E)

    # --- fused LSTM cell: one (E+H, 4H) bf16 matmul on concat([emb, h]) ---
    xh = jnp.concatenate([emb, h], axis=1).astype(bf16)
    gates = jnp.dot(xh, w_x_ref[...], preferred_element_type=jnp.float32) + b_x_ref[...]
    i_g = jax.nn.sigmoid(gates[:, 0 * H:1 * H])
    f_g = jax.nn.sigmoid(gates[:, 1 * H:2 * H])
    g_g = jnp.tanh(gates[:, 2 * H:3 * H])
    o_g = jax.nn.sigmoid(gates[:, 3 * H:4 * H])
    c_new = f_g * c + i_g * g_g
    h_new = o_g * jnp.tanh(c_new)

    # --- batched attention on the MXU: beams of batch b attend over enc[b];
    #     cross-batch columns are killed by the precomputed additive bias. ---
    att = (jnp.dot(h_new.astype(bf16), enc_km_ref[...],
                   preferred_element_type=jnp.float32)               # (Bk_pad, B*S)
           + bias_ref[...])
    att = att - jnp.max(att, axis=-1, keepdims=True)
    e = jnp.exp(att)
    w = e * pl.reciprocal(jnp.sum(e, axis=-1, keepdims=True), approx=True)
    ctx = jnp.dot(w.astype(bf16), enc_vm_ref[...],
                  preferred_element_type=jnp.float32)                # (Bk_pad, H)

    # --- fused combine: one (2H, H) bf16 matmul on concat([h_new, ctx]) ---
    comb = jnp.tanh(
        jnp.dot(jnp.concatenate([h_new, ctx], axis=1).astype(bf16), w_c_ref[...],
                preferred_element_type=jnp.float32) + b_c_ref[...])  # (Bk_pad, H)

    # --- vocab projection (lane-padded) + log_softmax (f32) ---
    logits = (jnp.dot(comb.astype(bf16), w_o_ref[...],
                      preferred_element_type=jnp.float32) + b_o_ref[...])
    mx = jnp.max(logits, axis=-1, keepdims=True)
    lse = mx + jnp.log(jnp.sum(jnp.exp(logits - mx), axis=-1, keepdims=True))
    logp = logits - lse                                              # (Bk_pad, V_pad) f32
    logp_ref[0] = logp.astype(logp_ref.dtype)

    # =====================================================================
    # Beam-score update + per-batch top-k, restructured:
    #   Stage A: per-row top-k over the vocab axis (k vectorized passes over
    #            the full matrix) -> (Bk_pad, k) candidate scores / tokens.
    #   Stage B: per-batch B*k selection on the tiny candidate matrix.
    # =====================================================================
    total = logp + seq                                               # (Bk_pad, V_pad)

    bigV_f = jnp.float32(V_pad + 1)
    cur = total
    cs_cols = []
    ct_cols = []
    for _ in range(k):
        m = jnp.max(cur, axis=1, keepdims=True)                      # (Bk_pad, 1)
        sel = cur >= m
        idx_f = jnp.min(jnp.where(sel, vcol_f, bigV_f),
                        axis=1, keepdims=True)                       # (Bk_pad, 1)
        idx_i = idx_f.astype(jnp.int32)
        cs_cols.append(m)
        ct_cols.append(idx_f)
        cur = jnp.where(vcol_i == idx_i, neg, cur)
    cscore = jnp.concatenate(cs_cols, axis=1)                        # (Bk_pad, k) f32
    ctok_f = jnp.concatenate(ct_cols, axis=1)                        # (Bk_pad, k) f32

    # candidate id = row * k_pow + rank  (small, exact everywhere)
    k_pow = 1 << (k - 1).bit_length() if k > 1 else 1
    shift_k = k_pow.bit_length() - 1
    rank_i = jax.lax.broadcasted_iota(jnp.int32, (Bk_pad, k), 1)
    cand_id = rows_col * k_pow + rank_i                              # (Bk_pad, k) int32
    cand_id_f = cand_id.astype(jnp.float32)
    big_c = jnp.float32(Bk_pad * k_pow + 1)

    score_vec = jnp.zeros((Bk_pad, 1), jnp.float32)
    tok_vec = jnp.zeros((Bk_pad, 1), jnp.int32)
    pred_vec = jnp.zeros((Bk_pad, 1), jnp.int32)
    perm = jnp.zeros((Bk_pad, Bk_pad), jnp.float32)

    for b in range(B):
        mask_b = jnp.logical_and(rows_col >= b * k, rows_col < (b + 1) * k)  # (Bk_pad,1)
        cur2 = jnp.where(mask_b, cscore, neg)                        # (Bk_pad, k)
        for j in range(k):
            mbest = jnp.max(jnp.max(cur2, axis=1, keepdims=True),
                            axis=0, keepdims=True)                   # (1,1)
            sel = jnp.logical_and(cur2 >= mbest, mask_b)
            cid_f = jnp.min(jnp.min(jnp.where(sel, cand_id_f, big_c),
                                    axis=1, keepdims=True),
                            axis=0, keepdims=True)                   # (1,1)
            cid = cid_f.astype(jnp.int32)
            pred = jnp.right_shift(cid, shift_k)                     # global beam row
            hit = cand_id == cid                                     # (Bk_pad, k)
            tok_f = jnp.sum(jnp.sum(jnp.where(hit, ctok_f, 0.0),
                                    axis=1, keepdims=True),
                            axis=0, keepdims=True)                   # (1,1)
            token = tok_f.astype(jnp.int32)

            out_row = b * k + j
            is_row = rows_col == out_row
            score_vec = jnp.where(is_row, mbest, score_vec)
            tok_vec = jnp.where(is_row, token, tok_vec)
            pred_vec = jnp.where(is_row, pred, pred_vec)
            perm = jnp.where(is_row, (beams_row == pred).astype(jnp.float32), perm)

            cur2 = jnp.where(hit, neg, cur2)

    # --- packed lane-dense per-step metadata: [pred, token, score, 0, ...] ---
    lane = jax.lax.broadcasted_iota(jnp.int32, (Bk_pad, META_LANES), 1)
    meta = jnp.where(lane == 0, pred_vec.astype(jnp.float32),
                     jnp.where(lane == 1, tok_vec.astype(jnp.float32),
                               jnp.where(lane == 2, score_vec, jnp.float32(0.0))))
    meta_ref[0] = meta          # score stored BEFORE EOS masking (matches reference)

    # --- reorder hidden state by predecessors (small permutation matmul) ---
    h_scr[...] = jnp.dot(perm, h_new, preferred_element_type=jnp.float32)
    c_scr[...] = jnp.dot(perm, c_new, preferred_element_type=jnp.float32)
    tok_scr[...] = tok_vec
    seq_scr[...] = jnp.where(tok_vec == EOS, neg, score_vec)


def run_fused_decode(emb_pad, w_x, b_x, w_c, b_c, w_o_pad, b_o_pad,
                     enc_km, enc_vm, att_bias,
                     h0, c0, seq0, tok0, *, B, k, V_pad, EOS, max_length):
    Bk_pad, H = h0.shape
    T = max_length

    def cmap2(t):
        return (0, 0)

    resident_inputs = (emb_pad, w_x, b_x, w_c, b_c, w_o_pad, b_o_pad,
                       enc_km, enc_vm, att_bias, h0, c0, seq0, tok0)
    in_specs = [pl.BlockSpec(a.shape, cmap2) for a in resident_inputs]

    out_specs = (
        pl.BlockSpec((1, Bk_pad, V_pad), lambda t: (t, 0, 0)),         # log-probs (bf16)
        pl.BlockSpec((1, Bk_pad, META_LANES), lambda t: (t, 0, 0)),    # pred/sym/score
    )
    out_shape = (
        jax.ShapeDtypeStruct((T, Bk_pad, V_pad), jnp.bfloat16),
        jax.ShapeDtypeStruct((T, Bk_pad, META_LANES), jnp.float32),
    )

    # explicit VMEM budget: double-buffered resident inputs + output blocks
    def _nbytes(a):
        return int(a.size) * jnp.dtype(a.dtype).itemsize
    est = (2 * sum(_nbytes(a) for a in resident_inputs)
           + 2 * (Bk_pad * V_pad * 2 + Bk_pad * META_LANES * 4)
           + 2 * Bk_pad * H * 4 + 2 * Bk_pad * 4
           + (8 << 20))                                                # headroom
    try:
        vmem_cap = int(pltpu.get_tpu_info().vmem_capacity_bytes)
    except Exception:
        vmem_cap = 64 << 20
    vmem_limit = max(16 << 20, min(est, int(0.85 * vmem_cap), 100 << 20))

    kern = functools.partial(fused_decode_kernel, B=B, k=k, V_pad=V_pad, EOS=EOS)
    return pl.pallas_call(
        kern,
        out_shape=out_shape,
        grid_spec=pltpu.PrefetchScalarGridSpec(
            num_scalar_prefetch=0,
            grid=(T,),
            in_specs=in_specs,
            out_specs=out_specs,
            scratch_shapes=[
                pltpu.VMEM((Bk_pad, H), jnp.float32),   # h
                pltpu.VMEM((Bk_pad, H), jnp.float32),   # c
                pltpu.VMEM((Bk_pad, 1), jnp.float32),   # sequence scores
                pltpu.VMEM((Bk_pad, 1), jnp.int32),     # last tokens
            ]),
        compiler_params=pltpu.CompilerParams(
            dimension_semantics=("arbitrary",),
            vmem_limit_bytes=vmem_limit),
    )(*resident_inputs)


# --------------------------------------------------------------------------
# TopKDecoder.forward: one pallas_call for the decode loop + index-only
# backtrack in JAX glue.
# --------------------------------------------------------------------------
def topk_decode(encoder_hidden, encoder_outputs, params, *,
                k, V, SOS, EOS, max_length):
    B, S, H = encoder_outputs.shape
    E = params["embedding"].shape[1]
    Bk = B * k
    Bk_pad = _round_up(Bk, 8)
    V_pad = _round_up(max(V, 128), 128)     # lane-dense vocab axis

    pos_index = (jnp.arange(B, dtype=jnp.int32) * k)[:, None]

    # pad / fuse / bf16-cast parameters once; they stay VMEM-resident
    emb_pad = jnp.zeros((V_pad, E), jnp.float32).at[:V].set(
        params["embedding"]).astype(jnp.bfloat16)
    w_x = jnp.concatenate([params["w_ih"], params["w_hh"]], axis=0).astype(jnp.bfloat16)
    b_x = params["b_ih"].astype(jnp.float32)
    w_c = jnp.concatenate([params["w_ch"], params["w_cc"]], axis=0).astype(jnp.bfloat16)
    b_c = params["b_c"].astype(jnp.float32)
    w_o_pad = jnp.zeros((H, V_pad), jnp.float32).at[:, :V].set(
        params["w_out"]).astype(jnp.bfloat16)
    b_o_pad = jnp.full((1, V_pad), PAD_BIAS, jnp.float32).at[:, :V].set(params["b_out"])

    # encoder operands for batched attention (not k-inflated)
    enc_km = jnp.transpose(encoder_outputs, (2, 0, 1)).reshape(H, B * S).astype(jnp.bfloat16)
    enc_vm = encoder_outputs.reshape(B * S, H).astype(jnp.bfloat16)
    row_b = jnp.arange(Bk_pad, dtype=jnp.int32) // k           # >= B for pad rows
    col_b = jnp.arange(B * S, dtype=jnp.int32) // S
    att_bias = jnp.where(row_b[:, None] == col_b[None, :], 0.0, ATT_BIAS
                         ).astype(jnp.float32)                 # (Bk_pad, B*S)

    # initial beam state, rows padded to a multiple of 8
    h0, c0 = encoder_hidden                                    # (1, B, H) each
    h_init = jnp.zeros((Bk_pad, H), jnp.float32).at[:Bk].set(jnp.repeat(h0[0], k, axis=0))
    c_init = jnp.zeros((Bk_pad, H), jnp.float32).at[:Bk].set(jnp.repeat(c0[0], k, axis=0))
    seq_init = jnp.full((Bk_pad, 1), NEG_INF, jnp.float32)
    seq_init = seq_init.at[jnp.arange(B) * k, 0].set(0.0)
    tok_init = jnp.full((Bk_pad, 1), SOS, jnp.int32)

    logp_all, meta_all = run_fused_decode(
        emb_pad, w_x, b_x, w_c, b_c, w_o_pad, b_o_pad,
        enc_km, enc_vm, att_bias,
        h_init, c_init, seq_init, tok_init,
        B=B, k=k, V_pad=V_pad, EOS=EOS, max_length=max_length)

    logp_real = logp_all[:, :Bk, :V].astype(jnp.float32)       # (T, Bk, V)
    pred_all = meta_all[:, :Bk, 0].astype(jnp.int32)           # (T, Bk)
    sym_all = meta_all[:, :Bk, 1].astype(jnp.int32)            # (T, Bk)
    score_all = meta_all[:, :Bk, 2]                            # (T, Bk)

    # ---------------- backtrack: indices only, one big gather at the end ----
    sorted_score, sorted_idx = jax.lax.top_k(score_all[-1].reshape(B, k), k)
    s = sorted_score
    t_pred = (sorted_idx + pos_index).reshape(Bk)

    gather_rows = []
    for t in range(max_length - 1, -1, -1):
        gather_rows.append(t_pred)
        t_pred = pred_all[t][t_pred]
    gather_rows = jnp.stack(gather_rows[::-1], axis=0)         # (T, Bk)

    s, re_idx = jax.lax.top_k(s, k)
    re_idx_flat = (re_idx + pos_index).reshape(Bk)
    final_rows = gather_rows[:, re_idx_flat]                   # (T, Bk)

    p = jnp.take_along_axis(sym_all, final_rows, axis=1)       # (T, Bk)
    topk_sequence = p.reshape(max_length, B, k).transpose(1, 2, 0)   # (B, k, T)

    rows0 = final_rows.reshape(max_length, B, k)[:, :, 0]      # (T, B)
    decoder_outputs = logp_real[jnp.arange(max_length)[:, None], rows0, :]  # (T, B, V)

    # TODO(synk): the EOS-finished-beam re-insertion inside _backtrack (a
    # data-dependent host-side loop that also fills h_n and per-beam lengths)
    # is not reproduced; h_n stays zero, matching the PyTorch reference
    # whenever no beam terminates with <eos>.
    h_n = (jnp.zeros((1, B, k, H), jnp.float32),
           jnp.zeros((1, B, k, H), jnp.float32))
    decoder_hidden = tuple(hh[:, :, 0, :] for hh in h_n)       # (1, B, H) x2

    metadata = {
        "score": s,
        "topk_sequence": topk_sequence,
        "sequence": topk_sequence[:, 0, :],
        "length": jnp.full((B,), max_length, dtype=jnp.int32),
    }
    return decoder_outputs, decoder_hidden, metadata


# --------------------------------------------------------------------------
def init_params(key, V, E, H):
    ks = jax.random.split(key, 8)
    n = lambda kk, shape: (0.1 * jax.random.normal(kk, shape)).astype(jnp.float32)
    return {
        "embedding": n(ks[0], (V, E)),
        "w_ih": n(ks[1], (E, 4 * H)),
        "w_hh": n(ks[2], (H, 4 * H)),
        "b_ih": jnp.zeros((1, 4 * H), jnp.float32),
        "w_ch": n(ks[3], (H, H)),
        "w_cc": n(ks[4], (H, H)),
        "b_c": jnp.zeros((1, H), jnp.float32),
        "w_out": n(ks[5], (H, V)),
        "b_out": jnp.zeros((1, V), jnp.float32),
    }


if __name__ == "__main__":
    B, S, H, E = 2, 8, 32, 32
    V, K, MAX_LEN = 16, 3, 8
    SOS, EOS = 1, 2

    root = jax.random.PRNGKey(0)
    k_param, k_h, k_c, k_enc = jax.random.split(root, 4)

    params = init_params(k_param, V, E, H)
    encoder_hidden = (
        (0.1 * jax.random.normal(k_h, (1, B, H))).astype(jnp.float32),
        (0.1 * jax.random.normal(k_c, (1, B, H))).astype(jnp.float32),
    )
    encoder_outputs = (0.1 * jax.random.normal(k_enc, (B, S, H))).astype(jnp.float32)

    decode = jax.jit(functools.partial(
        topk_decode, k=K, V=V, SOS=SOS, EOS=EOS, max_length=MAX_LEN))
    dec_out, dec_hidden, meta = decode(encoder_hidden, encoder_outputs, params)

    jax.block_until_ready((dec_out, dec_hidden, meta["topk_sequence"], meta["score"]))
    assert dec_out.shape == (MAX_LEN, B, V)
    assert dec_hidden[0].shape == (1, B, H)
    assert meta["topk_sequence"].shape == (B, K, MAX_LEN)
    print("KERNEL_OK")
</pallas_src>

<mosaic_0001>
module attributes {stable_mosaic.version = 11 : i64} {
  func.func @fused_decode_kernel(%arg0: i32, %arg1: memref<128x32xbf16, #tpu.memory_space<vmem>>, %arg2: memref<64x128xbf16, #tpu.memory_space<vmem>>, %arg3: memref<1x128xf32, #tpu.memory_space<vmem>>, %arg4: memref<64x32xbf16, #tpu.memory_space<vmem>>, %arg5: memref<1x32xf32, #tpu.memory_space<vmem>>, %arg6: memref<32x128xbf16, #tpu.memory_space<vmem>>, %arg7: memref<1x128xf32, #tpu.memory_space<vmem>>, %arg8: memref<32x16xbf16, #tpu.memory_space<vmem>>, %arg9: memref<16x32xbf16, #tpu.memory_space<vmem>>, %arg10: memref<8x16xf32, #tpu.memory_space<vmem>>, %arg11: memref<8x32xf32, #tpu.memory_space<vmem>>, %arg12: memref<8x32xf32, #tpu.memory_space<vmem>>, %arg13: memref<8x1xf32, #tpu.memory_space<vmem>>, %arg14: memref<8x1xi32, #tpu.memory_space<vmem>>, %arg15: memref<1x8x128xbf16, #tpu.memory_space<vmem>>, %arg16: memref<1x8x128xf32, #tpu.memory_space<vmem>>, %arg17: memref<8x32xf32, #tpu.memory_space<vmem>>, %arg18: memref<8x32xf32, #tpu.memory_space<vmem>>, %arg19: memref<8x1xf32, #tpu.memory_space<vmem>>, %arg20: memref<8x1xi32, #tpu.memory_space<vmem>>) attributes {dimension_semantics = [#tpu.dimension_semantics<arbitrary>], iteration_bounds = array<i64: 8>, scalar_prefetch = 0 : i64, scratch_operands = 4 : i64, tpu.core_type = #tpu.core_type<tc>, window_params = [{pipeline_mode = #tpu.pipeline_mode<synchronous>, transform_indices = @transform_0, window_bounds = array<i64: 128, 32>}, {pipeline_mode = #tpu.pipeline_mode<synchronous>, transform_indices = @transform_1, window_bounds = array<i64: 64, 128>}, {pipeline_mode = #tpu.pipeline_mode<synchronous>, transform_indices = @transform_2, window_bounds = array<i64: 1, 128>}, {pipeline_mode = #tpu.pipeline_mode<synchronous>, transform_indices = @transform_3, window_bounds = array<i64: 64, 32>}, {pipeline_mode = #tpu.pipeline_mode<synchronous>, transform_indices = @transform_4, window_bounds = array<i64: 1, 32>}, {pipeline_mode = #tpu.pipeline_mode<synchronous>, transform_indices = @transform_5, window_bounds = array<i64: 32, 128>}, {pipeline_mode = #tpu.pipeline_mode<synchronous>, transform_indices = @transform_6, window_bounds = array<i64: 1, 128>}, {pipeline_mode = #tpu.pipeline_mode<synchronous>, transform_indices = @transform_7, window_bounds = array<i64: 32, 16>}, {pipeline_mode = #tpu.pipeline_mode<synchronous>, transform_indices = @transform_8, window_bounds = array<i64: 16, 32>}, {pipeline_mode = #tpu.pipeline_mode<synchronous>, transform_indices = @transform_9, window_bounds = array<i64: 8, 16>}, {pipeline_mode = #tpu.pipeline_mode<synchronous>, transform_indices = @transform_10, window_bounds = array<i64: 8, 32>}, {pipeline_mode = #tpu.pipeline_mode<synchronous>, transform_indices = @transform_11, window_bounds = array<i64: 8, 32>}, {pipeline_mode = #tpu.pipeline_mode<synchronous>, transform_indices = @transform_12, window_bounds = array<i64: 8, 1>}, {pipeline_mode = #tpu.pipeline_mode<synchronous>, transform_indices = @transform_13, window_bounds = array<i64: 8, 1>}, {transform_indices = @transform_14, window_bounds = array<i64: 1, 8, 128>}, {transform_indices = @transform_15, window_bounds = array<i64: 1, 8, 128>}]} {
    %c0_i32 = arith.constant 0 : i32
    %0 = arith.cmpi eq, %arg0, %c0_i32 : i32
    %1 = arith.extui %0 : i1 to i32
    %c0_i32_0 = arith.constant 0 : i32
    %2 = arith.cmpi ne, %1, %c0_i32_0 : i32
    scf.if %2 {
      %c0_142 = arith.constant 0 : index
      %c0_143 = arith.constant 0 : index
      %488 = vector.load %arg11[%c0_142, %c0_143] : memref<8x32xf32, #tpu.memory_space<vmem>>, vector<8x32xf32>
      %c0_144 = arith.constant 0 : index
      %c0_145 = arith.constant 0 : index
      %489 = vector.load %arg17[%c0_144, %c0_145] : memref<8x32xf32, #tpu.memory_space<vmem>>, vector<8x32xf32>
      tpu.vector_store %arg17[%c0_144, %c0_145], %488 {strides = array<i32>} : memref<8x32xf32, #tpu.memory_space<vmem>>, vector<8x32xf32>,
      %c0_146 = arith.constant 0 : index
      %c0_147 = arith.constant 0 : index
      %490 = vector.load %arg12[%c0_146, %c0_147] : memref<8x32xf32, #tpu.memory_space<vmem>>, vector<8x32xf32>
      %c0_148 = arith.constant 0 : index
      %c0_149 = arith.constant 0 : index
      %491 = vector.load %arg18[%c0_148, %c0_149] : memref<8x32xf32, #tpu.memory_space<vmem>>, vector<8x32xf32>
      tpu.vector_store %arg18[%c0_148, %c0_149], %490 {strides = array<i32>} : memref<8x32xf32, #tpu.memory_space<vmem>>, vector<8x32xf32>,
      %c0_150 = arith.constant 0 : index
      %c0_151 = arith.constant 0 : index
      %492 = vector.load %arg13[%c0_150, %c0_151] : memref<8x1xf32, #tpu.memory_space<vmem>>, vector<8x1xf32>
      %c0_152 = arith.constant 0 : index
      %c0_153 = arith.constant 0 : index
      %493 = vector.load %arg19[%c0_152, %c0_153] : memref<8x1xf32, #tpu.memory_space<vmem>>, vector<8x1xf32>
      tpu.vector_store %arg19[%c0_152, %c0_153], %492 {strides = array<i32>} : memref<8x1xf32, #tpu.memory_space<vmem>>, vector<8x1xf32>,
      %c0_154 = arith.constant 0 : index
      %c0_155 = arith.constant 0 : index
      %494 = vector.load %arg14[%c0_154, %c0_155] : memref<8x1xi32, #tpu.memory_space<vmem>>, vector<8x1xi32>
      %c0_156 = arith.constant 0 : index
      %c0_157 = arith.constant 0 : index
      %495 = vector.load %arg20[%c0_156, %c0_157] : memref<8x1xi32, #tpu.memory_space<vmem>>, vector<8x1xi32>
      tpu.vector_store %arg20[%c0_156, %c0_157], %494 {strides = array<i32>} : memref<8x1xi32, #tpu.memory_space<vmem>>, vector<8x1xi32>,
    } else {
    }
    %c0 = arith.constant 0 : index
    %c0_1 = arith.constant 0 : index
    %3 = vector.load %arg17[%c0, %c0_1] : memref<8x32xf32, #tpu.memory_space<vmem>>, vector<8x32xf32>
    %c0_2 = arith.constant 0 : index
    %c0_3 = arith.constant 0 : index
    %4 = vector.load %arg18[%c0_2, %c0_3] : memref<8x32xf32, #tpu.memory_space<vmem>>, vector<8x32xf32>
    %c0_4 = arith.constant 0 : index
    %c0_5 = arith.constant 0 : index
    %5 = vector.load %arg20[%c0_4, %c0_5] : memref<8x1xi32, #tpu.memory_space<vmem>>, vector<8x1xi32>
    %c0_6 = arith.constant 0 : index
    %c0_7 = arith.constant 0 : index
    %6 = vector.load %arg19[%c0_6, %c0_7] : memref<8x1xf32, #tpu.memory_space<vmem>>, vector<8x1xf32>
    %7 = tpu.iota {dimensions = array<i32: 0>} : vector<8x1xi32>
    %8 = tpu.iota {dimensions = array<i32: 1>} : vector<1x8xi32>
    %9 = tpu.iota {dimensions = array<i32: 1>} : vector<1x128xi32>
    %10 = arith.sitofp %9 : vector<1x128xi32> to vector<1x128xf32>
    %11 = vector.broadcast %9 : vector<1x128xi32> to vector<8x128xi32>
    %12 = vector.broadcast %5 : vector<8x1xi32> to vector<8x128xi32>
    %13 = arith.cmpi eq, %11, %12 : vector<8x128xi32>
    %14 = arith.extui %13 : vector<8x128xi1> to vector<8x128xi32>
    %15 = arith.sitofp %14 : vector<8x128xi32> to vector<8x128xf32>
    %16 = arith.truncf %15 : vector<8x128xf32> to vector<8x128xbf16>
    %c0_8 = arith.constant 0 : index
    %c0_9 = arith.constant 0 : index
    %17 = vector.load %arg1[%c0_8, %c0_9] : memref<128x32xbf16, #tpu.memory_space<vmem>>, vector<128x32xbf16>
    %cst = arith.constant dense<0.000000e+00> : vector<8x32xf32>
    %18 = tpu.matmul %16, %17, %cst {dimension_numbers = #tpu.dot_dimension_numbers<[1], [0], [0], [1], [0, 0, 1, 1], [], []>} : vector<8x128xbf16>, vector<128x32xbf16>, vector<8x32xf32> -> vector<8x32xf32>
    %19 = tpu.concatenate %18, %3 in 1 : vector<8x32xf32>, vector<8x32xf32> -> vector<8x64xf32>
    %20 = arith.truncf %19 : vector<8x64xf32> to vector<8x64xbf16>
    %c0_10 = arith.constant 0 : index
    %c0_11 = arith.constant 0 : index
    %21 = vector.load %arg2[%c0_10, %c0_11] : memref<64x128xbf16, #tpu.memory_space<vmem>>, vector<64x128xbf16>
    %cst_12 = arith.constant dense<0.000000e+00> : vector<8x128xf32>
    %22 = tpu.matmul %20, %21, %cst_12 {dimension_numbers = #tpu.dot_dimension_numbers<[1], [0], [0], [1], [0, 0, 1, 1], [], []>} : vector<8x64xbf16>, vector<64x128xbf16>, vector<8x128xf32> -> vector<8x128xf32>
    %c0_13 = arith.constant 0 : index
    %c0_14 = arith.constant 0 : index
    %23 = vector.load %arg3[%c0_13, %c0_14] : memref<1x128xf32, #tpu.memory_space<vmem>>, vector<1x128xf32>
    %24 = vector.broadcast %23 : vector<1x128xf32> to vector<8x128xf32>
    %25 = arith.addf %22, %24 : vector<8x128xf32>
    %26 = vector.extract_strided_slice %25 {offsets = [0, 0], sizes = [8, 32], strides = [1, 1]} : vector<8x128xf32> to vector<8x32xf32>
    %27 = arith.negf %26 : vector<8x32xf32>
    %28 = math.exp %27 : vector<8x32xf32>
    %cst_15 = arith.constant 1.000000e+00 : f32
    %29 = vector.broadcast %cst_15 : f32 to vector<8x32xf32>
    %30 = arith.addf %29, %28 : vector<8x32xf32>
    %31 = arith.divf %29, %30 : vector<8x32xf32>
    %32 = vector.extract_strided_slice %25 {offsets = [0, 32], sizes = [8, 32], strides = [1, 1]} : vector<8x128xf32> to vector<8x32xf32>
    %33 = arith.negf %32 : vector<8x32xf32>
    %34 = math.exp %33 : vector<8x32xf32>
    %cst_16 = arith.constant 1.000000e+00 : f32
    %35 = vector.broadcast %cst_16 : f32 to vector<8x32xf32>
    %36 = arith.addf %35, %34 : vector<8x32xf32>
    %37 = arith.divf %35, %36 : vector<8x32xf32>
    %38 = vector.extract_strided_slice %25 {offsets = [0, 64], sizes = [8, 32], strides = [1, 1]} : vector<8x128xf32> to vector<8x32xf32>
    %39 = math.tanh %38 : vector<8x32xf32>
    %40 = vector.extract_strided_slice %25 {offsets = [0, 96], sizes = [8, 32], strides = [1, 1]} : vector<8x128xf32> to vector<8x32xf32>
    %41 = arith.negf %40 : vector<8x32xf32>
    %42 = math.exp %41 : vector<8x32xf32>
    %cst_17 = arith.constant 1.000000e+00 : f32
    %43 = vector.broadcast %cst_17 : f32 to vector<8x32xf32>
    %44 = arith.addf %43, %42 : vector<8x32xf32>
    %45 = arith.divf %43, %44 : vector<8x32xf32>
    %46 = arith.mulf %37, %4 : vector<8x32xf32>
    %47 = arith.mulf %31, %39 : vector<8x32xf32>
    %48 = arith.addf %46, %47 : vector<8x32xf32>
    %49 = math.tanh %48 : vector<8x32xf32>
    %50 = arith.mulf %45, %49 : vector<8x32xf32>
    %51 = arith.truncf %50 : vector<8x32xf32> to vector<8x32xbf16>
    %c0_18 = arith.constant 0 : index
    %c0_19 = arith.constant 0 : index
    %52 = vector.load %arg8[%c0_18, %c0_19] : memref<32x16xbf16, #tpu.memory_space<vmem>>, vector<32x16xbf16>
    %cst_20 = arith.constant dense<0.000000e+00> : vector<8x16xf32>
    %53 = tpu.matmul %51, %52, %cst_20 {dimension_numbers = #tpu.dot_dimension_numbers<[1], [0], [0], [1], [0, 0, 1, 1], [], []>} : vector<8x32xbf16>, vector<32x16xbf16>, vector<8x16xf32> -> vector<8x16xf32>
    %c0_21 = arith.constant 0 : index
    %c0_22 = arith.constant 0 : index
    %54 = vector.load %arg10[%c0_21, %c0_22] : memref<8x16xf32, #tpu.memory_space<vmem>>, vector<8x16xf32>
    %55 = arith.addf %53, %54 : vector<8x16xf32>
    %cst_23 = arith.constant dense<0xFF800000> : vector<8xf32>
    %56 = vector.multi_reduction <maximumf>, %55, %cst_23 [1] : vector<8x16xf32> to vector<8xf32>
    %57 = vector.shape_cast %56 : vector<8xf32> to vector<8x1xf32>
    %58 = vector.broadcast %57 : vector<8x1xf32> to vector<8x16xf32>
    %59 = arith.subf %55, %58 : vector<8x16xf32>
    %60 = math.exp %59 : vector<8x16xf32>
    %cst_24 = arith.constant dense<0.000000e+00> : vector<8xf32>
    %61 = vector.multi_reduction <add>, %60, %cst_24 [1] : vector<8x16xf32> to vector<8xf32>
    %62 = vector.shape_cast %61 : vector<8xf32> to vector<8x1xf32>
    %63 = tpu.reciprocal %62 {approx = true} : vector<8x1xf32> -> vector<8x1xf32>
    %64 = vector.broadcast %63 : vector<8x1xf32> to vector<8x16xf32>
    %65 = arith.mulf %60, %64 : vector<8x16xf32>
    %66 = arith.truncf %65 : vector<8x16xf32> to vector<8x16xbf16>
    %c0_25 = arith.constant 0 : index
    %c0_26 = arith.constant 0 : index
    %67 = vector.load %arg9[%c0_25, %c0_26] : memref<16x32xbf16, #tpu.memory_space<vmem>>, vector<16x32xbf16>
    %cst_27 = arith.constant dense<0.000000e+00> : vector<8x32xf32>
    %68 = tpu.matmul %66, %67, %cst_27 {dimension_numbers = #tpu.dot_dimension_numbers<[1], [0], [0], [1], [0, 0, 1, 1], [], []>} : vector<8x16xbf16>, vector<16x32xbf16>, vector<8x32xf32> -> vector<8x32xf32>
    %69 = tpu.concatenate %50, %68 in 1 : vector<8x32xf32>, vector<8x32xf32> -> vector<8x64xf32>
    %70 = arith.truncf %69 : vector<8x64xf32> to vector<8x64xbf16>
    %c0_28 = arith.constant 0 : index
    %c0_29 = arith.constant 0 : index
    %71 = vector.load %arg4[%c0_28, %c0_29] : memref<64x32xbf16, #tpu.memory_space<vmem>>, vector<64x32xbf16>
    %cst_30 = arith.constant dense<0.000000e+00> : vector<8x32xf32>
    %72 = tpu.matmul %70, %71, %cst_30 {dimension_numbers = #tpu.dot_dimension_numbers<[1], [0], [0], [1], [0, 0, 1, 1], [], []>} : vector<8x64xbf16>, vector<64x32xbf16>, vector<8x32xf32> -> vector<8x32xf32>
    %c0_31 = arith.constant 0 : index
    %c0_32 = arith.constant 0 : index
    %73 = vector.load %arg5[%c0_31, %c0_32] : memref<1x32xf32, #tpu.memory_space<vmem>>, vector<1x32xf32>
    %74 = vector.broadcast %73 : vector<1x32xf32> to vector<8x32xf32>
    %75 = arith.addf %72, %74 : vector<8x32xf32>
    %76 = math.tanh %75 : vector<8x32xf32>
    %77 = arith.truncf %76 : vector<8x32xf32> to vector<8x32xbf16>
    %c0_33 = arith.constant 0 : index
    %c0_34 = arith.constant 0 : index
    %78 = vector.load %arg6[%c0_33, %c0_34] : memref<32x128xbf16, #tpu.memory_space<vmem>>, vector<32x128xbf16>
    %cst_35 = arith.constant dense<0.000000e+00> : vector<8x128xf32>
    %79 = tpu.matmul %77, %78, %cst_35 {dimension_numbers = #tpu.dot_dimension_numbers<[1], [0], [0], [1], [0, 0, 1, 1], [], []>} : vector<8x32xbf16>, vector<32x128xbf16>, vector<8x128xf32> -> vector<8x128xf32>
    %c0_36 = arith.constant 0 : index
    %c0_37 = arith.constant 0 : index
    %80 = vector.load %arg7[%c0_36, %c0_37] : memref<1x128xf32, #tpu.memory_space<vmem>>, vector<1x128xf32>
    %81 = vector.broadcast %80 : vector<1x128xf32> to vector<8x128xf32>
    %82 = arith.addf %79, %81 : vector<8x128xf32>
    %cst_38 = arith.constant dense<0xFF800000> : vector<8xf32>
    %83 = vector.multi_reduction <maximumf>, %82, %cst_38 [1] : vector<8x128xf32> to vector<8xf32>
    %84 = vector.shape_cast %83 : vector<8xf32> to vector<8x1xf32>
    %85 = vector.broadcast %84 : vector<8x1xf32> to vector<8x128xf32>
    %86 = arith.subf %82, %85 : vector<8x128xf32>
    %87 = math.exp %86 : vector<8x128xf32>
    %cst_39 = arith.constant dense<0.000000e+00> : vector<8xf32>
    %88 = vector.multi_reduction <add>, %87, %cst_39 [1] : vector<8x128xf32> to vector<8xf32>
    %89 = vector.shape_cast %88 : vector<8xf32> to vector<8x1xf32>
    %90 = math.log %89 : vector<8x1xf32>
    %91 = arith.addf %84, %90 : vector<8x1xf32>
    %92 = vector.broadcast %91 : vector<8x1xf32> to vector<8x128xf32>
    %93 = arith.subf %82, %92 : vector<8x128xf32>
    %94 = arith.truncf %93 : vector<8x128xf32> to vector<8x128xbf16>
    %c0_40 = arith.constant 0 : index
    %c0_41 = arith.constant 0 : index
    %c0_42 = arith.constant 0 : index
    %95 = vector.load %arg15[%c0_40, %c0_41, %c0_42] : memref<1x8x128xbf16, #tpu.memory_space<vmem>>, vector<1x8x128xbf16>
    %96 = vector.shape_cast %95 : vector<1x8x128xbf16> to vector<8x128xbf16>
    %97 = vector.shape_cast %94 : vector<8x128xbf16> to vector<1x8x128xbf16>
    tpu.vector_store %arg15[%c0_40, %c0_41, %c0_42], %97 {strides = array<i32>} : memref<1x8x128xbf16, #tpu.memory_space<vmem>>, vector<1x8x128xbf16>,
    %98 = vector.broadcast %6 : vector<8x1xf32> to vector<8x128xf32>
    %99 = arith.addf %93, %98 : vector<8x128xf32>
    %cst_43 = arith.constant dense<0xFF800000> : vector<8xf32>
    %100 = vector.multi_reduction <maximumf>, %99, %cst_43 [1] : vector<8x128xf32> to vector<8xf32>
    %101 = vector.shape_cast %100 : vector<8xf32> to vector<8x1xf32>
    %102 = vector.broadcast %101 : vector<8x1xf32> to vector<8x128xf32>
    %103 = arith.cmpf oge, %99, %102 : vector<8x128xf32>
    %cst_44 = arith.constant 1.290000e+02 : f32
    %104 = vector.shape_cast %10 : vector<1x128xf32> to vector<1x128xf32>
    %105 = vector.broadcast %104 : vector<1x128xf32> to vector<8x128xf32>
    %106 = vector.broadcast %cst_44 : f32 to vector<8x128xf32>
    %107 = arith.select %103, %105, %106 : vector<8x128xi1>, vector<8x128xf32>
    %cst_45 = arith.constant dense<0x7F800000> : vector<8xf32>
    %108 = vector.multi_reduction <minimumf>, %107, %cst_45 [1] : vector<8x128xf32> to vector<8xf32>
    %109 = vector.shape_cast %108 : vector<8xf32> to vector<8x1xf32>
    %110 = arith.fptosi %109 : vector<8x1xf32> to vector<8x1xi32>
    %111 = vector.broadcast %9 : vector<1x128xi32> to vector<8x128xi32>
    %112 = vector.broadcast %110 : vector<8x1xi32> to vector<8x128xi32>
    %113 = arith.cmpi eq, %111, %112 : vector<8x128xi32>
    %cst_46 = arith.constant 0xFF800000 : f32
    %114 = vector.broadcast %cst_46 : f32 to vector<8x128xf32>
    %115 = arith.select %113, %114, %99 : vector<8x128xi1>, vector<8x128xf32>
    %cst_47 = arith.constant dense<0xFF800000> : vector<8xf32>
    %116 = vector.multi_reduction <maximumf>, %115, %cst_47 [1] : vector<8x128xf32> to vector<8xf32>
    %117 = vector.shape_cast %116 : vector<8xf32> to vector<8x1xf32>
    %118 = vector.broadcast %117 : vector<8x1xf32> to vector<8x128xf32>
    %119 = arith.cmpf oge, %115, %118 : vector<8x128xf32>
    %cst_48 = arith.constant 1.290000e+02 : f32
    %120 = vector.shape_cast %10 : vector<1x128xf32> to vector<1x128xf32>
    %121 = vector.broadcast %120 : vector<1x128xf32> to vector<8x128xf32>
    %122 = vector.broadcast %cst_48 : f32 to vector<8x128xf32>
    %123 = arith.select %119, %121, %122 : vector<8x128xi1>, vector<8x128xf32>
    %cst_49 = arith.constant dense<0x7F800000> : vector<8xf32>
    %124 = vector.multi_reduction <minimumf>, %123, %cst_49 [1] : vector<8x128xf32> to vector<8xf32>
    %125 = vector.shape_cast %124 : vector<8xf32> to vector<8x1xf32>
    %126 = arith.fptosi %125 : vector<8x1xf32> to vector<8x1xi32>
    %127 = vector.broadcast %9 : vector<1x128xi32> to vector<8x128xi32>
    %128 = vector.broadcast %126 : vector<8x1xi32> to vector<8x128xi32>
    %129 = arith.cmpi eq, %127, %128 : vector<8x128xi32>
    %cst_50 = arith.constant 0xFF800000 : f32
    %130 = vector.broadcast %cst_50 : f32 to vector<8x128xf32>
    %131 = arith.select %129, %130, %115 : vector<8x128xi1>, vector<8x128xf32>
    %cst_51 = arith.constant dense<0xFF800000> : vector<8xf32>
    %132 = vector.multi_reduction <maximumf>, %131, %cst_51 [1] : vector<8x128xf32> to vector<8xf32>
    %133 = vector.shape_cast %132 : vector<8xf32> to vector<8x1xf32>
    %134 = vector.broadcast %133 : vector<8x1xf32> to vector<8x128xf32>
    %135 = arith.cmpf oge, %131, %134 : vector<8x128xf32>
    %cst_52 = arith.constant 1.290000e+02 : f32
    %136 = vector.shape_cast %10 : vector<1x128xf32> to vector<1x128xf32>
    %137 = vector.broadcast %136 : vector<1x128xf32> to vector<8x128xf32>
    %138 = vector.broadcast %cst_52 : f32 to vector<8x128xf32>
    %139 = arith.select %135, %137, %138 : vector<8x128xi1>, vector<8x128xf32>
    %cst_53 = arith.constant dense<0x7F800000> : vector<8xf32>
    %140 = vector.multi_reduction <minimumf>, %139, %cst_53 [1] : vector<8x128xf32> to vector<8xf32>
    %141 = vector.shape_cast %140 : vector<8xf32> to vector<8x1xf32>
    %142 = tpu.concatenate %101, %117, %133 in 1 : vector<8x1xf32>, vector<8x1xf32>, vector<8x1xf32> -> vector<8x3xf32>
    %143 = tpu.concatenate %109, %125, %141 in 1 : vector<8x1xf32>, vector<8x1xf32>, vector<8x1xf32> -> vector<8x3xf32>
    %144 = tpu.iota {dimensions = array<i32: 1>} : vector<8x3xi32>
    %c4_i32 = arith.constant 4 : i32
    %145 = vector.broadcast %c4_i32 : i32 to vector<8x1xi32>
    %146 = arith.muli %7, %145 : vector<8x1xi32>
    %147 = vector.broadcast %146 : vector<8x1xi32> to vector<8x3xi32>
    %148 = arith.addi %147, %144 : vector<8x3xi32>
    %149 = arith.sitofp %148 : vector<8x3xi32> to vector<8x3xf32>
    %cst_54 = arith.constant 0.000000e+00 : f32
    %150 = vector.broadcast %cst_54 : f32 to vector<8x1xf32>
    %c0_i32_55 = arith.constant 0 : i32
    %151 = vector.broadcast %c0_i32_55 : i32 to vector<8x1xi32>
    %c0_i32_56 = arith.constant 0 : i32
    %152 = vector.broadcast %c0_i32_56 : i32 to vector<8x1xi32>
    %cst_57 = arith.constant 0.000000e+00 : f32
    %153 = vector.broadcast %cst_57 : f32 to vector<8x8xf32>
    %c0_i32_58 = arith.constant 0 : i32
    %154 = vector.broadcast %c0_i32_58 : i32 to vector<8x1xi32>
    %155 = arith.cmpi sge, %7, %154 : vector<8x1xi32>
    %c3_i32 = arith.constant 3 : i32
    %156 = vector.broadcast %c3_i32 : i32 to vector<8x1xi32>
    %157 = arith.cmpi slt, %7, %156 : vector<8x1xi32>
    %158 = arith.andi %155, %157 : vector<8x1xi1>
    %cst_59 = arith.constant 0xFF800000 : f32
    %159 = vector.shape_cast %158 : vector<8x1xi1> to vector<8x1xi1>
    %160 = vector.broadcast %159 : vector<8x1xi1> to vector<8x3xi1>
    %161 = vector.broadcast %cst_59 : f32 to vector<8x3xf32>
    %162 = arith.select %160, %142, %161 : vector<8x3xi1>, vector<8x3xf32>
    %cst_60 = arith.constant dense<0xFF800000> : vector<8xf32>
    %163 = vector.multi_reduction <maximumf>, %162, %cst_60 [1] : vector<8x3xf32> to vector<8xf32>
    %164 = vector.shape_cast %163 : vector<8xf32> to vector<8x1xf32>
    %cst_61 = arith.constant dense<0xFF800000> : vector<1xf32>
    %165 = vector.multi_reduction <maximumf>, %164, %cst_61 [0] : vector<8x1xf32> to vector<1xf32>
    %166 = vector.shape_cast %165 : vector<1xf32> to vector<1x1xf32>
    %167 = vector.broadcast %166 : vector<1x1xf32> to vector<8x3xf32>
    %168 = arith.cmpf oge, %162, %167 : vector<8x3xf32>
    %169 = vector.broadcast %158 : vector<8x1xi1> to vector<8x3xi1>
    %170 = arith.andi %168, %169 : vector<8x3xi1>
    %cst_62 = arith.constant 3.300000e+01 : f32
    %171 = vector.broadcast %cst_62 : f32 to vector<8x3xf32>
    %172 = arith.select %170, %149, %171 : vector<8x3xi1>, vector<8x3xf32>
    %cst_63 = arith.constant dense<0x7F800000> : vector<8xf32>
    %173 = vector.multi_reduction <minimumf>, %172, %cst_63 [1] : vector<8x3xf32> to vector<8xf32>
    %174 = vector.shape_cast %173 : vector<8xf32> to vector<8x1xf32>
    %cst_64 = arith.constant dense<0x7F800000> : vector<1xf32>
    %175 = vector.multi_reduction <minimumf>, %174, %cst_64 [0] : vector<8x1xf32> to vector<1xf32>
    %176 = vector.shape_cast %175 : vector<1xf32> to vector<1x1xf32>
    %177 = arith.fptosi %176 : vector<1x1xf32> to vector<1x1xi32>
    %c2_i32 = arith.constant 2 : i32
    %178 = vector.broadcast %c2_i32 : i32 to vector<1x1xi32>
    %179 = arith.shrsi %177, %178 : vector<1x1xi32>
    %180 = vector.broadcast %177 : vector<1x1xi32> to vector<8x3xi32>
    %181 = arith.cmpi eq, %148, %180 : vector<8x3xi32>
    %cst_65 = arith.constant 0.000000e+00 : f32
    %182 = vector.broadcast %cst_65 : f32 to vector<8x3xf32>
    %183 = arith.select %181, %143, %182 : vector<8x3xi1>, vector<8x3xf32>
    %cst_66 = arith.constant dense<0.000000e+00> : vector<8xf32>
    %184 = vector.multi_reduction <add>, %183, %cst_66 [1] : vector<8x3xf32> to vector<8xf32>
    %185 = vector.shape_cast %184 : vector<8xf32> to vector<8x1xf32>
    %cst_67 = arith.constant dense<0.000000e+00> : vector<1xf32>
    %186 = vector.multi_reduction <add>, %185, %cst_67 [0] : vector<8x1xf32> to vector<1xf32>
    %187 = vector.shape_cast %186 : vector<1xf32> to vector<1x1xf32>
    %188 = arith.fptosi %187 : vector<1x1xf32> to vector<1x1xi32>
    %c0_i32_68 = arith.constant 0 : i32
    %189 = vector.broadcast %c0_i32_68 : i32 to vector<8x1xi32>
    %190 = arith.cmpi eq, %7, %189 : vector<8x1xi32>
    %191 = vector.shape_cast %166 : vector<1x1xf32> to vector<1x1xf32>
    %192 = vector.broadcast %191 : vector<1x1xf32> to vector<8x1xf32>
    %193 = arith.select %190, %192, %150 : vector<8x1xi1>, vector<8x1xf32>
    %194 = vector.shape_cast %188 : vector<1x1xi32> to vector<1x1xi32>
    %195 = vector.broadcast %194 : vector<1x1xi32> to vector<8x1xi32>
    %196 = arith.select %190, %195, %151 : vector<8x1xi1>, vector<8x1xi32>
    %197 = vector.shape_cast %179 : vector<1x1xi32> to vector<1x1xi32>
    %198 = vector.broadcast %197 : vector<1x1xi32> to vector<8x1xi32>
    %199 = arith.select %190, %198, %152 : vector<8x1xi1>, vector<8x1xi32>
    %200 = vector.broadcast %179 : vector<1x1xi32> to vector<1x8xi32>
    %201 = arith.cmpi eq, %8, %200 : vector<1x8xi32>
    %202 = arith.extui %201 : vector<1x8xi1> to vector<1x8xi32>
    %203 = arith.sitofp %202 : vector<1x8xi32> to vector<1x8xf32>
    %204 = vector.shape_cast %190 : vector<8x1xi1> to vector<8x1xi1>
    %205 = vector.broadcast %204 : vector<8x1xi1> to vector<8x8xi1>
    %206 = vector.shape_cast %203 : vector<1x8xf32> to vector<1x8xf32>
    %207 = vector.broadcast %206 : vector<1x8xf32> to vector<8x8xf32>
    %208 = arith.select %205, %207, %153 : vector<8x8xi1>, vector<8x8xf32>
    %cst_69 = arith.constant 0xFF800000 : f32
    %209 = vector.broadcast %cst_69 : f32 to vector<8x3xf32>
    %210 = arith.select %181, %209, %162 : vector<8x3xi1>, vector<8x3xf32>
    %cst_70 = arith.constant dense<0xFF800000> : vector<8xf32>
    %211 = vector.multi_reduction <maximumf>, %210, %cst_70 [1] : vector<8x3xf32> to vector<8xf32>
    %212 = vector.shape_cast %211 : vector<8xf32> to vector<8x1xf32>
    %cst_71 = arith.constant dense<0xFF800000> : vector<1xf32>
    %213 = vector.multi_reduction <maximumf>, %212, %cst_71 [0] : vector<8x1xf32> to vector<1xf32>
    %214 = vector.shape_cast %213 : vector<1xf32> to vector<1x1xf32>
    %215 = vector.broadcast %214 : vector<1x1xf32> to vector<8x3xf32>
    %216 = arith.cmpf oge, %210, %215 : vector<8x3xf32>
    %217 = vector.broadcast %158 : vector<8x1xi1> to vector<8x3xi1>
    %218 = arith.andi %216, %217 : vector<8x3xi1>
    %cst_72 = arith.constant 3.300000e+01 : f32
    %219 = vector.broadcast %cst_72 : f32 to vector<8x3xf32>
    %220 = arith.select %218, %149, %219 : vector<8x3xi1>, vector<8x3xf32>
    %cst_73 = arith.constant dense<0x7F800000> : vector<8xf32>
    %221 = vector.multi_reduction <minimumf>, %220, %cst_73 [1] : vector<8x3xf32> to vector<8xf32>
    %222 = vector.shape_cast %221 : vector<8xf32> to vector<8x1xf32>
    %cst_74 = arith.constant dense<0x7F800000> : vector<1xf32>
    %223 = vector.multi_reduction <minimumf>, %222, %cst_74 [0] : vector<8x1xf32> to vector<1xf32>
    %224 = vector.shape_cast %223 : vector<1xf32> to vector<1x1xf32>
    %225 = arith.fptosi %224 : vector<1x1xf32> to vector<1x1xi32>
    %c2_i32_75 = arith.constant 2 : i32
    %226 = vector.broadcast %c2_i32_75 : i32 to vector<1x1xi32>
    %227 = arith.shrsi %225, %226 : vector<1x1xi32>
    %228 = vector.broadcast %225 : vector<1x1xi32> to vector<8x3xi32>
    %229 = arith.cmpi eq, %148, %228 : vector<8x3xi32>
    %cst_76 = arith.constant 0.000000e+00 : f32
    %230 = vector.broadcast %cst_76 : f32 to vector<8x3xf32>
    %231 = arith.select %229, %143, %230 : vector<8x3xi1>, vector<8x3xf32>
    %cst_77 = arith.constant dense<0.000000e+00> : vector<8xf32>
    %232 = vector.multi_reduction <add>, %231, %cst_77 [1] : vector<8x3xf32> to vector<8xf32>
    %233 = vector.shape_cast %232 : vector<8xf32> to vector<8x1xf32>
    %cst_78 = arith.constant dense<0.000000e+00> : vector<1xf32>
    %234 = vector.multi_reduction <add>, %233, %cst_78 [0] : vector<8x1xf32> to vector<1xf32>
    %235 = vector.shape_cast %234 : vector<1xf32> to vector<1x1xf32>
    %236 = arith.fptosi %235 : vector<1x1xf32> to vector<1x1xi32>
    %c1_i32 = arith.constant 1 : i32
    %237 = vector.broadcast %c1_i32 : i32 to vector<8x1xi32>
    %238 = arith.cmpi eq, %7, %237 : vector<8x1xi32>
    %239 = vector.shape_cast %214 : vector<1x1xf32> to vector<1x1xf32>
    %240 = vector.broadcast %239 : vector<1x1xf32> to vector<8x1xf32>
    %241 = arith.select %238, %240, %193 : vector<8x1xi1>, vector<8x1xf32>
    %242 = vector.shape_cast %236 : vector<1x1xi32> to vector<1x1xi32>
    %243 = vector.broadcast %242 : vector<1x1xi32> to vector<8x1xi32>
    %244 = arith.select %238, %243, %196 : vector<8x1xi1>, vector<8x1xi32>
    %245 = vector.shape_cast %227 : vector<1x1xi32> to vector<1x1xi32>
    %246 = vector.broadcast %245 : vector<1x1xi32> to vector<8x1xi32>
    %247 = arith.select %238, %246, %199 : vector<8x1xi1>, vector<8x1xi32>
    %248 = vector.broadcast %227 : vector<1x1xi32> to vector<1x8xi32>
    %249 = arith.cmpi eq, %8, %248 : vector<1x8xi32>
    %250 = arith.extui %249 : vector<1x8xi1> to vector<1x8xi32>
    %251 = arith.sitofp %250 : vector<1x8xi32> to vector<1x8xf32>
    %252 = vector.shape_cast %238 : vector<8x1xi1> to vector<8x1xi1>
    %253 = vector.broadcast %252 : vector<8x1xi1> to vector<8x8xi1>
    %254 = vector.shape_cast %251 : vector<1x8xf32> to vector<1x8xf32>
    %255 = vector.broadcast %254 : vector<1x8xf32> to vector<8x8xf32>
    %256 = arith.select %253, %255, %208 : vector<8x8xi1>, vector<8x8xf32>
    %cst_79 = arith.constant 0xFF800000 : f32
    %257 = vector.broadcast %cst_79 : f32 to vector<8x3xf32>
    %258 = arith.select %229, %257, %210 : vector<8x3xi1>, vector<8x3xf32>
    %cst_80 = arith.constant dense<0xFF800000> : vector<8xf32>
    %259 = vector.multi_reduction <maximumf>, %258, %cst_80 [1] : vector<8x3xf32> to vector<8xf32>
    %260 = vector.shape_cast %259 : vector<8xf32> to vector<8x1xf32>
    %cst_81 = arith.constant dense<0xFF800000> : vector<1xf32>
    %261 = vector.multi_reduction <maximumf>, %260, %cst_81 [0] : vector<8x1xf32> to vector<1xf32>
    %262 = vector.shape_cast %261 : vector<1xf32> to vector<1x1xf32>
    %263 = vector.broadcast %262 : vector<1x1xf32> to vector<8x3xf32>
    %264 = arith.cmpf oge, %258, %263 : vector<8x3xf32>
    %265 = vector.broadcast %158 : vector<8x1xi1> to vector<8x3xi1>
    %266 = arith.andi %264, %265 : vector<8x3xi1>
    %cst_82 = arith.constant 3.300000e+01 : f32
    %267 = vector.broadcast %cst_82 : f32 to vector<8x3xf32>
    %268 = arith.select %266, %149, %267 : vector<8x3xi1>, vector<8x3xf32>
    %cst_83 = arith.constant dense<0x7F800000> : vector<8xf32>
    %269 = vector.multi_reduction <minimumf>, %268, %cst_83 [1] : vector<8x3xf32> to vector<8xf32>
    %270 = vector.shape_cast %269 : vector<8xf32> to vector<8x1xf32>
    %cst_84 = arith.constant dense<0x7F800000> : vector<1xf32>
    %271 = vector.multi_reduction <minimumf>, %270, %cst_84 [0] : vector<8x1xf32> to vector<1xf32>
    %272 = vector.shape_cast %271 : vector<1xf32> to vector<1x1xf32>
    %273 = arith.fptosi %272 : vector<1x1xf32> to vector<1x1xi32>
    %c2_i32_85 = arith.constant 2 : i32
    %274 = vector.broadcast %c2_i32_85 : i32 to vector<1x1xi32>
    %275 = arith.shrsi %273, %274 : vector<1x1xi32>
    %276 = vector.broadcast %273 : vector<1x1xi32> to vector<8x3xi32>
    %277 = arith.cmpi eq, %148, %276 : vector<8x3xi32>
    %cst_86 = arith.constant 0.000000e+00 : f32
    %278 = vector.broadcast %cst_86 : f32 to vector<8x3xf32>
    %279 = arith.select %277, %143, %278 : vector<8x3xi1>, vector<8x3xf32>
    %cst_87 = arith.constant dense<0.000000e+00> : vector<8xf32>
    %280 = vector.multi_reduction <add>, %279, %cst_87 [1] : vector<8x3xf32> to vector<8xf32>
    %281 = vector.shape_cast %280 : vector<8xf32> to vector<8x1xf32>
    %cst_88 = arith.constant dense<0.000000e+00> : vector<1xf32>
    %282 = vector.multi_reduction <add>, %281, %cst_88 [0] : vector<8x1xf32> to vector<1xf32>
    %283 = vector.shape_cast %282 : vector<1xf32> to vector<1x1xf32>
    %284 = arith.fptosi %283 : vector<1x1xf32> to vector<1x1xi32>
    %c2_i32_89 = arith.constant 2 : i32
    %285 = vector.broadcast %c2_i32_89 : i32 to vector<8x1xi32>
    %286 = arith.cmpi eq, %7, %285 : vector<8x1xi32>
    %287 = vector.shape_cast %262 : vector<1x1xf32> to vector<1x1xf32>
    %288 = vector.broadcast %287 : vector<1x1xf32> to vector<8x1xf32>
    %289 = arith.select %286, %288, %241 : vector<8x1xi1>, vector<8x1xf32>
    %290 = vector.shape_cast %284 : vector<1x1xi32> to vector<1x1xi32>
    %291 = vector.broadcast %290 : vector<1x1xi32> to vector<8x1xi32>
    %292 = arith.select %286, %291, %244 : vector<8x1xi1>, vector<8x1xi32>
    %293 = vector.shape_cast %275 : vector<1x1xi32> to vector<1x1xi32>
    %294 = vector.broadcast %293 : vector<1x1xi32> to vector<8x1xi32>
    %295 = arith.select %286, %294, %247 : vector<8x1xi1>, vector<8x1xi32>
    %296 = vector.broadcast %275 : vector<1x1xi32> to vector<1x8xi32>
    %297 = arith.cmpi eq, %8, %296 : vector<1x8xi32>
    %298 = arith.extui %297 : vector<1x8xi1> to vector<1x8xi32>
    %299 = arith.sitofp %298 : vector<1x8xi32> to vector<1x8xf32>
    %300 = vector.shape_cast %286 : vector<8x1xi1> to vector<8x1xi1>
    %301 = vector.broadcast %300 : vector<8x1xi1> to vector<8x8xi1>
    %302 = vector.shape_cast %299 : vector<1x8xf32> to vector<1x8xf32>
    %303 = vector.broadcast %302 : vector<1x8xf32> to vector<8x8xf32>
    %304 = arith.select %301, %303, %256 : vector<8x8xi1>, vector<8x8xf32>
    %c3_i32_90 = arith.constant 3 : i32
    %305 = vector.broadcast %c3_i32_90 : i32 to vector<8x1xi32>
    %306 = arith.cmpi sge, %7, %305 : vector<8x1xi32>
    %c6_i32 = arith.constant 6 : i32
    %307 = vector.broadcast %c6_i32 : i32 to vector<8x1xi32>
    %308 = arith.cmpi slt, %7, %307 : vector<8x1xi32>
    %309 = arith.andi %306, %308 : vector<8x1xi1>
    %cst_91 = arith.constant 0xFF800000 : f32
    %310 = vector.shape_cast %309 : vector<8x1xi1> to vector<8x1xi1>
    %311 = vector.broadcast %310 : vector<8x1xi1> to vector<8x3xi1>
    %312 = vector.broadcast %cst_91 : f32 to vector<8x3xf32>
    %313 = arith.select %311, %142, %312 : vector<8x3xi1>, vector<8x3xf32>
    %cst_92 = arith.constant dense<0xFF800000> : vector<8xf32>
    %314 = vector.multi_reduction <maximumf>, %313, %cst_92 [1] : vector<8x3xf32> to vector<8xf32>
    %315 = vector.shape_cast %314 : vector<8xf32> to vector<8x1xf32>
    %cst_93 = arith.constant dense<0xFF800000> : vector<1xf32>
    %316 = vector.multi_reduction <maximumf>, %315, %cst_93 [0] : vector<8x1xf32> to vector<1xf32>
    %317 = vector.shape_cast %316 : vector<1xf32> to vector<1x1xf32>
    %318 = vector.broadcast %317 : vector<1x1xf32> to vector<8x3xf32>
    %319 = arith.cmpf oge, %313, %318 : vector<8x3xf32>
    %320 = vector.broadcast %309 : vector<8x1xi1> to vector<8x3xi1>
    %321 = arith.andi %319, %320 : vector<8x3xi1>
    %cst_94 = arith.constant 3.300000e+01 : f32
    %322 = vector.broadcast %cst_94 : f32 to vector<8x3xf32>
    %323 = arith.select %321, %149, %322 : vector<8x3xi1>, vector<8x3xf32>
    %cst_95 = arith.constant dense<0x7F800000> : vector<8xf32>
    %324 = vector.multi_reduction <minimumf>, %323, %cst_95 [1] : vector<8x3xf32> to vector<8xf32>
    %325 = vector.shape_cast %324 : vector<8xf32> to vector<8x1xf32>
    %cst_96 = arith.constant dense<0x7F800000> : vector<1xf32>
    %326 = vector.multi_reduction <minimumf>, %325, %cst_96 [0] : vector<8x1xf32> to vector<1xf32>
    %327 = vector.shape_cast %326 : vector<1xf32> to vector<1x1xf32>
    %328 = arith.fptosi %327 : vector<1x1xf32> to vector<1x1xi32>
    %c2_i32_97 = arith.constant 2 : i32
    %329 = vector.broadcast %c2_i32_97 : i32 to vector<1x1xi32>
    %330 = arith.shrsi %328, %329 : vector<1x1xi32>
    %331 = vector.broadcast %328 : vector<1x1xi32> to vector<8x3xi32>
    %332 = arith.cmpi eq, %148, %331 : vector<8x3xi32>
    %cst_98 = arith.constant 0.000000e+00 : f32
    %333 = vector.broadcast %cst_98 : f32 to vector<8x3xf32>
    %334 = arith.select %332, %143, %333 : vector<8x3xi1>, vector<8x3xf32>
    %cst_99 = arith.constant dense<0.000000e+00> : vector<8xf32>
    %335 = vector.multi_reduction <add>, %334, %cst_99 [1] : vector<8x3xf32> to vector<8xf32>
    %336 = vector.shape_cast %335 : vector<8xf32> to vector<8x1xf32>
    %cst_100 = arith.constant dense<0.000000e+00> : vector<1xf32>
    %337 = vector.multi_reduction <add>, %336, %cst_100 [0] : vector<8x1xf32> to vector<1xf32>
    %338 = vector.shape_cast %337 : vector<1xf32> to vector<1x1xf32>
    %339 = arith.fptosi %338 : vector<1x1xf32> to vector<1x1xi32>
    %c3_i32_101 = arith.constant 3 : i32
    %340 = vector.broadcast %c3_i32_101 : i32 to vector<8x1xi32>
    %341 = arith.cmpi eq, %7, %340 : vector<8x1xi32>
    %342 = vector.shape_cast %317 : vector<1x1xf32> to vector<1x1xf32>
    %343 = vector.broadcast %342 : vector<1x1xf32> to vector<8x1xf32>
    %344 = arith.select %341, %343, %289 : vector<8x1xi1>, vector<8x1xf32>
    %345 = vector.shape_cast %339 : vector<1x1xi32> to vector<1x1xi32>
    %346 = vector.broadcast %345 : vector<1x1xi32> to vector<8x1xi32>
    %347 = arith.select %341, %346, %292 : vector<8x1xi1>, vector<8x1xi32>
    %348 = vector.shape_cast %330 : vector<1x1xi32> to vector<1x1xi32>
    %349 = vector.broadcast %348 : vector<1x1xi32> to vector<8x1xi32>
    %350 = arith.select %341, %349, %295 : vector<8x1xi1>, vector<8x1xi32>
    %351 = vector.broadcast %330 : vector<1x1xi32> to vector<1x8xi32>
    %352 = arith.cmpi eq, %8, %351 : vector<1x8xi32>
    %353 = arith.extui %352 : vector<1x8xi1> to vector<1x8xi32>
    %354 = arith.sitofp %353 : vector<1x8xi32> to vector<1x8xf32>
    %355 = vector.shape_cast %341 : vector<8x1xi1> to vector<8x1xi1>
    %356 = vector.broadcast %355 : vector<8x1xi1> to vector<8x8xi1>
    %357 = vector.shape_cast %354 : vector<1x8xf32> to vector<1x8xf32>
    %358 = vector.broadcast %357 : vector<1x8xf32> to vector<8x8xf32>
    %359 = arith.select %356, %358, %304 : vector<8x8xi1>, vector<8x8xf32>
    %cst_102 = arith.constant 0xFF800000 : f32
    %360 = vector.broadcast %cst_102 : f32 to vector<8x3xf32>
    %361 = arith.select %332, %360, %313 : vector<8x3xi1>, vector<8x3xf32>
    %cst_103 = arith.constant dense<0xFF800000> : vector<8xf32>
    %362 = vector.multi_reduction <maximumf>, %361, %cst_103 [1] : vector<8x3xf32> to vector<8xf32>
    %363 = vector.shape_cast %362 : vector<8xf32> to vector<8x1xf32>
    %cst_104 = arith.constant dense<0xFF800000> : vector<1xf32>
    %364 = vector.multi_reduction <maximumf>, %363, %cst_104 [0] : vector<8x1xf32> to vector<1xf32>
    %365 = vector.shape_cast %364 : vector<1xf32> to vector<1x1xf32>
    %366 = vector.broadcast %365 : vector<1x1xf32> to vector<8x3xf32>
    %367 = arith.cmpf oge, %361, %366 : vector<8x3xf32>
    %368 = vector.broadcast %309 : vector<8x1xi1> to vector<8x3xi1>
    %369 = arith.andi %367, %368 : vector<8x3xi1>
    %cst_105 = arith.constant 3.300000e+01 : f32
    %370 = vector.broadcast %cst_105 : f32 to vector<8x3xf32>
    %371 = arith.select %369, %149, %370 : vector<8x3xi1>, vector<8x3xf32>
    %cst_106 = arith.constant dense<0x7F800000> : vector<8xf32>
    %372 = vector.multi_reduction <minimumf>, %371, %cst_106 [1] : vector<8x3xf32> to vector<8xf32>
    %373 = vector.shape_cast %372 : vector<8xf32> to vector<8x1xf32>
    %cst_107 = arith.constant dense<0x7F800000> : vector<1xf32>
    %374 = vector.multi_reduction <minimumf>, %373, %cst_107 [0] : vector<8x1xf32> to vector<1xf32>
    %375 = vector.shape_cast %374 : vector<1xf32> to vector<1x1xf32>
    %376 = arith.fptosi %375 : vector<1x1xf32> to vector<1x1xi32>
    %c2_i32_108 = arith.constant 2 : i32
    %377 = vector.broadcast %c2_i32_108 : i32 to vector<1x1xi32>
    %378 = arith.shrsi %376, %377 : vector<1x1xi32>
    %379 = vector.broadcast %376 : vector<1x1xi32> to vector<8x3xi32>
    %380 = arith.cmpi eq, %148, %379 : vector<8x3xi32>
    %cst_109 = arith.constant 0.000000e+00 : f32
    %381 = vector.broadcast %cst_109 : f32 to vector<8x3xf32>
    %382 = arith.select %380, %143, %381 : vector<8x3xi1>, vector<8x3xf32>
    %cst_110 = arith.constant dense<0.000000e+00> : vector<8xf32>
    %383 = vector.multi_reduction <add>, %382, %cst_110 [1] : vector<8x3xf32> to vector<8xf32>
    %384 = vector.shape_cast %383 : vector<8xf32> to vector<8x1xf32>
    %cst_111 = arith.constant dense<0.000000e+00> : vector<1xf32>
    %385 = vector.multi_reduction <add>, %384, %cst_111 [0] : vector<8x1xf32> to vector<1xf32>
    %386 = vector.shape_cast %385 : vector<1xf32> to vector<1x1xf32>
    %387 = arith.fptosi %386 : vector<1x1xf32> to vector<1x1xi32>
    %c4_i32_112 = arith.constant 4 : i32
    %388 = vector.broadcast %c4_i32_112 : i32 to vector<8x1xi32>
    %389 = arith.cmpi eq, %7, %388 : vector<8x1xi32>
    %390 = vector.shape_cast %365 : vector<1x1xf32> to vector<1x1xf32>
    %391 = vector.broadcast %390 : vector<1x1xf32> to vector<8x1xf32>
    %392 = arith.select %389, %391, %344 : vector<8x1xi1>, vector<8x1xf32>
    %393 = vector.shape_cast %387 : vector<1x1xi32> to vector<1x1xi32>
    %394 = vector.broadcast %393 : vector<1x1xi32> to vector<8x1xi32>
    %395 = arith.select %389, %394, %347 : vector<8x1xi1>, vector<8x1xi32>
    %396 = vector.shape_cast %378 : vector<1x1xi32> to vector<1x1xi32>
    %397 = vector.broadcast %396 : vector<1x1xi32> to vector<8x1xi32>
    %398 = arith.select %389, %397, %350 : vector<8x1xi1>, vector<8x1xi32>
    %399 = vector.broadcast %378 : vector<1x1xi32> to vector<1x8xi32>
    %400 = arith.cmpi eq, %8, %399 : vector<1x8xi32>
    %401 = arith.extui %400 : vector<1x8xi1> to vector<1x8xi32>
    %402 = arith.sitofp %401 : vector<1x8xi32> to vector<1x8xf32>
    %403 = vector.shape_cast %389 : vector<8x1xi1> to vector<8x1xi1>
    %404 = vector.broadcast %403 : vector<8x1xi1> to vector<8x8xi1>
    %405 = vector.shape_cast %402 : vector<1x8xf32> to vector<1x8xf32>
    %406 = vector.broadcast %405 : vector<1x8xf32> to vector<8x8xf32>
    %407 = arith.select %404, %406, %359 : vector<8x8xi1>, vector<8x8xf32>
    %cst_113 = arith.constant 0xFF800000 : f32
    %408 = vector.broadcast %cst_113 : f32 to vector<8x3xf32>
    %409 = arith.select %380, %408, %361 : vector<8x3xi1>, vector<8x3xf32>
    %cst_114 = arith.constant dense<0xFF800000> : vector<8xf32>
    %410 = vector.multi_reduction <maximumf>, %409, %cst_114 [1] : vector<8x3xf32> to vector<8xf32>
    %411 = vector.shape_cast %410 : vector<8xf32> to vector<8x1xf32>
    %cst_115 = arith.constant dense<0xFF800000> : vector<1xf32>
    %412 = vector.multi_reduction <maximumf>, %411, %cst_115 [0] : vector<8x1xf32> to vector<1xf32>
    %413 = vector.shape_cast %412 : vector<1xf32> to vector<1x1xf32>
    %414 = vector.broadcast %413 : vector<1x1xf32> to vector<8x3xf32>
    %415 = arith.cmpf oge, %409, %414 : vector<8x3xf32>
    %416 = vector.broadcast %309 : vector<8x1xi1> to vector<8x3xi1>
    %417 = arith.andi %415, %416 : vector<8x3xi1>
    %cst_116 = arith.constant 3.300000e+01 : f32
    %418 = vector.broadcast %cst_116 : f32 to vector<8x3xf32>
    %419 = arith.select %417, %149, %418 : vector<8x3xi1>, vector<8x3xf32>
    %cst_117 = arith.constant dense<0x7F800000> : vector<8xf32>
    %420 = vector.multi_reduction <minimumf>, %419, %cst_117 [1] : vector<8x3xf32> to vector<8xf32>
    %421 = vector.shape_cast %420 : vector<8xf32> to vector<8x1xf32>
    %cst_118 = arith.constant dense<0x7F800000> : vector<1xf32>
    %422 = vector.multi_reduction <minimumf>, %421, %cst_118 [0] : vector<8x1xf32> to vector<1xf32>
    %423 = vector.shape_cast %422 : vector<1xf32> to vector<1x1xf32>
    %424 = arith.fptosi %423 : vector<1x1xf32> to vector<1x1xi32>
    %c2_i32_119 = arith.constant 2 : i32
    %425 = vector.broadcast %c2_i32_119 : i32 to vector<1x1xi32>
    %426 = arith.shrsi %424, %425 : vector<1x1xi32>
    %427 = vector.broadcast %424 : vector<1x1xi32> to vector<8x3xi32>
    %428 = arith.cmpi eq, %148, %427 : vector<8x3xi32>
    %cst_120 = arith.constant 0.000000e+00 : f32
    %429 = vector.broadcast %cst_120 : f32 to vector<8x3xf32>
    %430 = arith.select %428, %143, %429 : vector<8x3xi1>, vector<8x3xf32>
    %cst_121 = arith.constant dense<0.000000e+00> : vector<8xf32>
    %431 = vector.multi_reduction <add>, %430, %cst_121 [1] : vector<8x3xf32> to vector<8xf32>
    %432 = vector.shape_cast %431 : vector<8xf32> to vector<8x1xf32>
    %cst_122 = arith.constant dense<0.000000e+00> : vector<1xf32>
    %433 = vector.multi_reduction <add>, %432, %cst_122 [0] : vector<8x1xf32> to vector<1xf32>
    %434 = vector.shape_cast %433 : vector<1xf32> to vector<1x1xf32>
    %435 = arith.fptosi %434 : vector<1x1xf32> to vector<1x1xi32>
    %c5_i32 = arith.constant 5 : i32
    %436 = vector.broadcast %c5_i32 : i32 to vector<8x1xi32>
    %437 = arith.cmpi eq, %7, %436 : vector<8x1xi32>
    %438 = vector.shape_cast %413 : vector<1x1xf32> to vector<1x1xf32>
    %439 = vector.broadcast %438 : vector<1x1xf32> to vector<8x1xf32>
    %440 = arith.select %437, %439, %392 : vector<8x1xi1>, vector<8x1xf32>
    %441 = vector.shape_cast %435 : vector<1x1xi32> to vector<1x1xi32>
    %442 = vector.broadcast %441 : vector<1x1xi32> to vector<8x1xi32>
    %443 = arith.select %437, %442, %395 : vector<8x1xi1>, vector<8x1xi32>
    %444 = vector.shape_cast %426 : vector<1x1xi32> to vector<1x1xi32>
    %445 = vector.broadcast %444 : vector<1x1xi32> to vector<8x1xi32>
    %446 = arith.select %437, %445, %398 : vector<8x1xi1>, vector<8x1xi32>
    %447 = vector.broadcast %426 : vector<1x1xi32> to vector<1x8xi32>
    %448 = arith.cmpi eq, %8, %447 : vector<1x8xi32>
    %449 = arith.extui %448 : vector<1x8xi1> to vector<1x8xi32>
    %450 = arith.sitofp %449 : vector<1x8xi32> to vector<1x8xf32>
    %451 = vector.shape_cast %437 : vector<8x1xi1> to vector<8x1xi1>
    %452 = vector.broadcast %451 : vector<8x1xi1> to vector<8x8xi1>
    %453 = vector.shape_cast %450 : vector<1x8xf32> to vector<1x8xf32>
    %454 = vector.broadcast %453 : vector<1x8xf32> to vector<8x8xf32>
    %455 = arith.select %452, %454, %407 : vector<8x8xi1>, vector<8x8xf32>
    %456 = tpu.iota {dimensions = array<i32: 1>} : vector<8x128xi32>
    %c0_i32_123 = arith.constant 0 : i32
    %457 = vector.broadcast %c0_i32_123 : i32 to vector<8x128xi32>
    %458 = arith.cmpi eq, %456, %457 : vector<8x128xi32>
    %459 = arith.sitofp %446 : vector<8x1xi32> to vector<8x1xf32>
    %c1_i32_124 = arith.constant 1 : i32
    %460 = vector.broadcast %c1_i32_124 : i32 to vector<8x128xi32>
    %461 = arith.cmpi eq, %456, %460 : vector<8x128xi32>
    %462 = arith.sitofp %443 : vector<8x1xi32> to vector<8x1xf32>
    %c2_i32_125 = arith.constant 2 : i32
    %463 = vector.broadcast %c2_i32_125 : i32 to vector<8x128xi32>
    %464 = arith.cmpi eq, %456, %463 : vector<8x128xi32>
    %cst_126 = arith.constant 0.000000e+00 : f32
    %465 = vector.shape_cast %440 : vector<8x1xf32> to vector<8x1xf32>
    %466 = vector.broadcast %465 : vector<8x1xf32> to vector<8x128xf32>
    %467 = vector.broadcast %cst_126 : f32 to vector<8x128xf32>
    %468 = arith.select %464, %466, %467 : vector<8x128xi1>, vector<8x128xf32>
    %469 = vector.shape_cast %462 : vector<8x1xf32> to vector<8x1xf32>
    %470 = vector.broadcast %469 : vector<8x1xf32> to vector<8x128xf32>
    %471 = arith.select %461, %470, %468 : vector<8x128xi1>, vector<8x128xf32>
    %472 = vector.shape_cast %459 : vector<8x1xf32> to vector<8x1xf32>
    %473 = vector.broadcast %472 : vector<8x1xf32> to vector<8x128xf32>
    %474 = arith.select %458, %473, %471 : vector<8x128xi1>, vector<8x128xf32>
    %c0_127 = arith.constant 0 : index
    %c0_128 = arith.constant 0 : index
    %c0_129 = arith.constant 0 : index
    %475 = vector.load %arg16[%c0_127, %c0_128, %c0_129] : memref<1x8x128xf32, #tpu.memory_space<vmem>>, vector<1x8x128xf32>
    %476 = vector.shape_cast %475 : vector<1x8x128xf32> to vector<8x128xf32>
    %477 = vector.shape_cast %474 : vector<8x128xf32> to vector<1x8x128xf32>
    tpu.vector_store %arg16[%c0_127, %c0_128, %c0_129], %477 {strides = array<i32>} : memref<1x8x128xf32, #tpu.memory_space<vmem>>, vector<1x8x128xf32>,
    %cst_130 = arith.constant dense<0.000000e+00> : vector<8x32xf32>
    %478 = tpu.matmul %455, %50, %cst_130 {dimension_numbers = #tpu.dot_dimension_numbers<[1], [0], [0], [1], [0, 0, 1, 1], [], []>} : vector<8x8xf32>, vector<8x32xf32>, vector<8x32xf32> -> vector<8x32xf32>
    %c0_131 = arith.constant 0 : index
    %c0_132 = arith.constant 0 : index
    %479 = vector.load %arg17[%c0_131, %c0_132] : memref<8x32xf32, #tpu.memory_space<vmem>>, vector<8x32xf32>
    tpu.vector_store %arg17[%c0_131, %c0_132], %478 {strides = array<i32>} : memref<8x32xf32, #tpu.memory_space<vmem>>, vector<8x32xf32>,
    %cst_133 = arith.constant dense<0.000000e+00> : vector<8x32xf32>
    %480 = tpu.matmul %455, %48, %cst_133 {dimension_numbers = #tpu.dot_dimension_numbers<[1], [0], [0], [1], [0, 0, 1, 1], [], []>} : vector<8x8xf32>, vector<8x32xf32>, vector<8x32xf32> -> vector<8x32xf32>
    %c0_134 = arith.constant 0 : index
    %c0_135 = arith.constant 0 : index
    %481 = vector.load %arg18[%c0_134, %c0_135] : memref<8x32xf32, #tpu.memory_space<vmem>>, vector<8x32xf32>
    tpu.vector_store %arg18[%c0_134, %c0_135], %480 {strides = array<i32>} : memref<8x32xf32, #tpu.memory_space<vmem>>, vector<8x32xf32>,
    %c0_136 = arith.constant 0 : index
    %c0_137 = arith.constant 0 : index
    %482 = vector.load %arg20[%c0_136, %c0_137] : memref<8x1xi32, #tpu.memory_space<vmem>>, vector<8x1xi32>
    tpu.vector_store %arg20[%c0_136, %c0_137], %443 {strides = array<i32>} : memref<8x1xi32, #tpu.memory_space<vmem>>, vector<8x1xi32>,
    %c2_i32_138 = arith.constant 2 : i32
    %483 = vector.broadcast %c2_i32_138 : i32 to vector<8x1xi32>
    %484 = arith.cmpi eq, %443, %483 : vector<8x1xi32>
    %cst_139 = arith.constant 0xFF800000 : f32
    %485 = vector.broadcast %cst_139 : f32 to vector<8x1xf32>
    %486 = arith.select %484, %485, %440 : vector<8x1xi1>, vector<8x1xf32>
    %c0_140 = arith.constant 0 : index
    %c0_141 = arith.constant 0 : index
    %487 = vector.load %arg19[%c0_140, %c0_141] : memref<8x1xf32, #tpu.memory_space<vmem>>, vector<8x1xf32>
    tpu.vector_store %arg19[%c0_140, %c0_141], %486 {strides = array<i32>} : memref<8x1xf32, #tpu.memory_space<vmem>>, vector<8x1xf32>,
    return
  }
  func.func @transform_0(%arg0: i32) -> (i32, i32) {
    %c0_i32 = arith.constant 0 : i32
    %c0_i32_0 = arith.constant 0 : i32
    %c0_i32_1 = arith.constant 0 : i32
    return %c0_i32, %c0_i32_0 : i32, i32
  }
  func.func @transform_1(%arg0: i32) -> (i32, i32) {
    %c0_i32 = arith.constant 0 : i32
    %c0_i32_0 = arith.constant 0 : i32
    %c0_i32_1 = arith.constant 0 : i32
    return %c0_i32, %c0_i32_0 : i32, i32
  }
  func.func @transform_2(%arg0: i32) -> (i32, i32) {
    %c0_i32 = arith.constant 0 : i32
    %c0_i32_0 = arith.constant 0 : i32
    %c0_i32_1 = arith.constant 0 : i32
    return %c0_i32, %c0_i32_0 : i32, i32
  }
  func.func @transform_3(%arg0: i32) -> (i32, i32) {
    %c0_i32 = arith.constant 0 : i32
    %c0_i32_0 = arith.constant 0 : i32
    %c0_i32_1 = arith.constant 0 : i32
    return %c0_i32, %c0_i32_0 : i32, i32
  }
  func.func @transform_4(%arg0: i32) -> (i32, i32) {
    %c0_i32 = arith.constant 0 : i32
    %c0_i32_0 = arith.constant 0 : i32
    %c0_i32_1 = arith.constant 0 : i32
    return %c0_i32, %c0_i32_0 : i32, i32
  }
  func.func @transform_5(%arg0: i32) -> (i32, i32) {
    %c0_i32 = arith.constant 0 : i32
    %c0_i32_0 = arith.constant 0 : i32
    %c0_i32_1 = arith.constant 0 : i32
    return %c0_i32, %c0_i32_0 : i32, i32
  }
  func.func @transform_6(%arg0: i32) -> (i32, i32) {
    %c0_i32 = arith.constant 0 : i32
    %c0_i32_0 = arith.constant 0 : i32
    %c0_i32_1 = arith.constant 0 : i32
    return %c0_i32, %c0_i32_0 : i32, i32
  }
  func.func @transform_7(%arg0: i32) -> (i32, i32) {
    %c0_i32 = arith.constant 0 : i32
    %c0_i32_0 = arith.constant 0 : i32
    %c0_i32_1 = arith.constant 0 : i32
    return %c0_i32, %c0_i32_0 : i32, i32
  }
  func.func @transform_8(%arg0: i32) -> (i32, i32) {
    %c0_i32 = arith.constant 0 : i32
    %c0_i32_0 = arith.constant 0 : i32
    %c0_i32_1 = arith.constant 0 : i32
    return %c0_i32, %c0_i32_0 : i32, i32
  }
  func.func @transform_9(%arg0: i32) -> (i32, i32) {
    %c0_i32 = arith.constant 0 : i32
    %c0_i32_0 = arith.constant 0 : i32
    %c0_i32_1 = arith.constant 0 : i32
    return %c0_i32, %c0_i32_0 : i32, i32
  }
  func.func @transform_10(%arg0: i32) -> (i32, i32) {
    %c0_i32 = arith.constant 0 : i32
    %c0_i32_0 = arith.constant 0 : i32
    %c0_i32_1 = arith.constant 0 : i32
    return %c0_i32, %c0_i32_0 : i32, i32
  }
  func.func @transform_11(%arg0: i32) -> (i32, i32) {
    %c0_i32 = arith.constant 0 : i32
    %c0_i32_0 = arith.constant 0 : i32
    %c0_i32_1 = arith.constant 0 : i32
    return %c0_i32, %c0_i32_0 : i32, i32
  }
  func.func @transform_12(%arg0: i32) -> (i32, i32) {
    %c0_i32 = arith.constant 0 : i32
    %c0_i32_0 = arith.constant 0 : i32
    %c0_i32_1 = arith.constant 0 : i32
    return %c0_i32, %c0_i32_0 : i32, i32
  }
  func.func @transform_13(%arg0: i32) -> (i32, i32) {
    %c0_i32 = arith.constant 0 : i32
    %c0_i32_0 = arith.constant 0 : i32
    %c0_i32_1 = arith.constant 0 : i32
    return %c0_i32, %c0_i32_0 : i32, i32
  }
  func.func @transform_14(%arg0: i32) -> (i32, i32, i32) {
    %c0_i32 = arith.constant 0 : i32
    %c0_i32_0 = arith.constant 0 : i32
    %c0_i32_1 = arith.constant 0 : i32
    return %arg0, %c0_i32, %c0_i32_0 : i32, i32, i32
  }
  func.func @transform_15(%arg0: i32) -> (i32, i32, i32) {
    %c0_i32 = arith.constant 0 : i32
    %c0_i32_0 = arith.constant 0 : i32
    %c0_i32_1 = arith.constant 0 : i32
    return %arg0, %c0_i32, %c0_i32_0 : i32, i32, i32
  }
}

</mosaic_0001>

<bundles_post_ra>
// kernel: squeeze.20
= control target key start
LH: loop header
LB: loop body
LE: loop exit
PB: predicated region body
PF: predicated region fallthrough
CT: control target
= control target key end

     0   :  { %vm7_vm0 = vcmask 23552   ;;  %s39_s0 = inlined_call_operand.vmem [shape: f32[6], index: 0, kind: input, shape index: {}]   ;;  %s40_s1 = inlined_call_operand.vmem [shape: f32[2,3], index: 1, kind: output, shape index: {}]  }
   0x1   :  { %v4_v0 = vld [vmem:[%s39_s0] sm:$0x1]  ;;  %s22_s0 = smov 125  }
   0x2   :  { %5 = vst [vmem:[#allocation1] sm:$0x1] %v4_v0 }
   0x9   :  { %v9_v1 = vld [vmem:[#allocation1] sm:$0x1]  }
   0xa   :  { %v6_v2 = vld [vmem:[#allocation1] sm:$0x1]   ;;  %10 = vrot.lane.b32.xlu0 %v9_v1, %s22_s0 }
   0xb   :  { %8 = vst.msk [vmem:[#allocation0] sm:$0x1] %vm7_vm0, %v6_v2  }
  0x7c   :  { %v11_v3 = vpop.permute.xlu0 %10  }
  0x7d   :  { %14 = vst.msk [vmem:[#allocation0 + $0x1] sm:$0x1] %vm7_vm0, %v11_v3  }
  0x84   :  { %v17_v4 = vld [vmem:[#allocation0] sm:$0x3] }
  0x85   :  { %20 = vst [vmem:[%s40_s1] sm:$0x3] %v17_v4 }

// kernel: topk_decode.1
= control target key start
LH: loop header
LB: loop body
LE: loop exit
PB: predicated region body
PF: predicated region fallthrough
CT: control target
= control target key end

     0   :  { %s1678_s18 = smov 0   ;;  %s2060_s0 = inlined_call_operand.vmem [shape: bf16[128,32], index: 0, kind: input, shape index: {}]   ;;  %s2061_s1 = inlined_call_operand.vmem [shape: bf16[64,128], index: 1, kind: input, shape index: {}]   ;;  %s2062_s2 = inlined_call_operand.vmem [shape: f32[1,128], index: 2, kind: input, shape index: {}]   ;;  %s2063_s3 = inlined_call_operand.vmem [shape: bf16[64,32], index: 3, kind: input, shape index: {}]   ;;  %s2064_s4 = inlined_call_operand.vmem [shape: f32[1,32], index: 4, kind: input, shape index: {}]   ;;  %s2065_s5 = inlined_call_operand.vmem [shape: bf16[32,128], index: 5, kind: input, shape index: {}]   ;;  %s2066_s6 = inlined_call_operand.vmem [shape: f32[1,128], index: 6, kind: input, shape index: {}]   ;;  %s2067_s7 = inlined_call_operand.vmem [shape: bf16[32,16], index: 7, kind: input, shape index: {}]   ;;  %s2068_s8 = inlined_call_operand.vmem [shape: bf16[16,32], index: 8, kind: input, shape index: {}]   ;;  %s2069_s9 = inlined_call_operand.vmem [shape: f32[8,16], index: 9, kind: input, shape index: {}]   ;;  %s2070_s10 = inlined_call_operand.vmem [shape: f32[8,32], index: 10, kind: input, shape index: {}]   ;;  %s2071_s11 = inlined_call_operand.vmem [shape: f32[8,32], index: 11, kind: input, shape index: {}]   ;;  %s2072_s12 = inlined_call_operand.vmem [shape: f32[8,1], index: 12, kind: input, shape index: {}]   ;;  %s2073_s13 = inlined_call_operand.vmem [shape: s32[8,1], index: 13, kind: input, shape index: {}]   ;;  %s2074_s14 = inlined_call_operand.vmem [shape: bf16[8,8,128], index: 14, kind: output, shape index: {0}]   ;;  %s2075_s15 = inlined_call_operand.vmem [shape: f32[8,8,128], index: 15, kind: output, shape index: {1}]  }
   0x1 LB: > { %s1341_s19 = sadd.s32 4294967295, %s1590_s18   ;;  %p1344_p0 = scmp.ge.s32.totalorder %s1590_s18, 1  ;;  %s1590_s18 = sphi %s1678_s18, %s26_s18  }
   0x2   : > { %p430_p1 = scmp.lt.s32.totalorder %s1590_s18, 9 }
   0x4   : > { %p431_p2 = pnand %p1344_p0, %p430_p1 }
   0x5   : > { %p476_p3 = scmp.lt.s32.totalorder (!%p431_p2), %s1341_s19, 7  ;;  %p1347_p4 = scmp.ne.s32.totalorder (!%p431_p2), %s1341_s19, 0 }
   0x6   : > { %434 = sbr.rel (%p431_p2) target bundleno = 3570 (0xdf2), region = 76 }
   0xb   : > { %s477_s20 = scalar_select %p476_p3, %s1341_s19, 7 }
   0xc   : > { %488 = sbr.rel (%p1347_p4) target bundleno = 22 (0x16), region = 80 }
   0xd   : > { %s1345_s21 = sshll.u32 %s477_s20, 2  ;;  %s1346_s22 = sshll.u32 %s477_s20, 3 }
   0xe   : > { %s1689_s25 = scalar_lea.vmem %s2074_s14, %s1345_s21  ;;  %s1694_s28 = scalar_lea.vmem %s2075_s15, %s1346_s22 }
  0x11   : > { %v489_v0 = vld [vmem:[%s2070_s10] sm:$0xff]  ;;  %vm490_vm0 = vcmask 261120   ;;  %vm495_vm1 = vcmask 7168  }
  0x12   : > { %v492_v1 = vld [vmem:[%s2071_s11] sm:$0xff]  ;;  %491 = vst.msk [vmem:[#allocation2] sm:$0xff] %vm490_vm0, %v489_v0 }
  0x13   : > { %v494_v2 = vld [vmem:[%s2072_s12] sm:$0xff]  ;;  %493 = vst.msk [vmem:[#allocation3] sm:$0xff] %vm490_vm0, %v492_v1 }
  0x14   : > { %v497_v3 = vld [vmem:[%s2073_s13] sm:$0xff]  ;;  %496 = vst.msk [vmem:[#allocation4] sm:$0xff] %vm495_vm1, %v494_v2 }
  0x15   : > { %498 = vst.msk [vmem:[#allocation5] sm:$0xff] %vm495_vm1, %v497_v3 }
  0x16 PF: > { %v1458_v5 = vld [vmem:[%s2060_s0 + $0x38] sm:$0xff]  ;;  %v1592_v6 = vmov 0   ;;  %v1457_v7 = vld [vmem:[%s2060_s0 + $0x30] sm:$0xff]  ;;  %v1456_v8 = vld [vmem:[%s2060_s0 + $0x28] sm:$0xff]  ;;  %s1593_s16 = smov 32   ;;  %v503_v18 = vlaneseq  ;;  %vm2078_vm4 = vcmask 261120  }
  0x17   : > { %1556 = vset.pattern.permute.xlu0 %v1592_v6  ;;  %1562 = vset.pattern.permute.xlu1 %v1592_v6  ;;  %v1455_v9 = vld [vmem:[%s2060_s0 + $0x20] sm:$0xff]  ;;  %v1454_v10 = vld [vmem:[%s2060_s0 + $0x18] sm:$0xff]  ;;  %v1453_v11 = vld [vmem:[%s2060_s0 + $0x10] sm:$0xff]  ;;  %v1594_v21 = vmov 1.0|1.0   ;;  %vm635_vm5 = vcmask 523264  }
  0x18   : > { %579 = vmatpush.bf16.msra.mxu0 %v1458_v5  ;;  %v1452_v12 = vld [vmem:[%s2060_s0 + $0x8] sm:$0xff]  ;;  %v1451_v13 = vld [vmem:[%s2060_s0] sm:$0xff]  ;;  %v1462_v15 = vld [vmem:[%s2061_s1 + $0x18] sm:$0xff]  ;;  %v1743_v19 = vand.u32 127, %v503_v18  ;;  %s1595_s27 = smov 64   ;;  %vm730_vm10 = vcmask 130048  }
  0x19   : > { %v499_v14 = vld [vmem:[#allocation2] sm:$0xff]  ;;  %643 = vmatpush.bf16.msra.mxu1 %v1462_v15  ;;  %v1461_v16 = vld [vmem:[%s2061_s1 + $0x10] sm:$0xff]  ;;  %v1460_v17 = vld [vmem:[%s2061_s1 + $0x8] sm:$0xff] }
  0x1a   : > { %v1459_v22 = vld [vmem:[%s2061_s1] sm:$0xff]  ;;  %v500_v33 = vld [vmem:[#allocation3] sm:$0xff] }
  0x1b   : > { %v1563_v28 = vld [vmem:[%s2062_s2] ss:$0 sm:$0xff]  ;;  %v1464_v54 = vld [vmem:[%s2067_s7 + $0x8] sm:$0xff] }
  0x1c   : > { %v501_v4 = vld [vmem:[#allocation5] sm:$0xff]  ;;  %580 = vmatpush.bf16.msra.mxu0 %v1457_v7  ;;  %723 = vmatpush.bf16.msra.mxu2 %v1464_v54  ;;  %v1463_v55 = vld [vmem:[%s2067_s7] sm:$0xff] }
  0x1d   : > { %509 = vperm.xlu0 %1556, %v501_v4   ;;  %644 = vmatpush.bf16.msra.mxu1 %v1461_v16  ;;  %v698_v60 = vld [vmem:[%s2069_s9] sm:$0xff] }
  0x1e   : > { %v1465_v6 = vld [vmem:[%s2068_s8] sm:$0xff] }
  0x1f   : > { %761 = vmatpush.bf16.msra.mxu3 %v1465_v6 }
  0x20   : > { %581 = vmatpush.bf16.msra.mxu0 %v1456_v8  ;;  %724 = vmatpush.bf16.msra.mxu2 %v1463_v55 }
  0x21   : > { %645 = vmatpush.bf16.msra.mxu1 %v1460_v17  ;;  %v1466_v17 = vld [vmem:[%s2063_s3] sm:$0xff] }
  0x24   : > { %582 = vmatpush.bf16.msra.mxu0 %v1455_v9 }
  0x25   : > { %593 = vrot.lane.b32.xlu0 %v499_v14, %s1593_s16  ;;  %646 = vmatpush.bf16.msra.mxu1 %v1459_v22 }
  0x28   : > { %583 = vmatpush.bf16.msra.mxu0 %v1454_v10 }
  0x2c   : > { %584 = vmatpush.bf16.msra.mxu0 %v1453_v11  ;;  %v1469_v11 = vld [vmem:[%s2063_s3 + $0x18] sm:$0xff] }
  0x2d   : > { %820 = vmatpush.bf16.msrb.mxu3 %v1469_v11 }
  0x30   : > { %585 = vmatpush.bf16.msra.mxu0 %v1452_v12  ;;  %v1468_v12 = vld [vmem:[%s2063_s3 + $0x10] sm:$0xff] }
  0x31   : > { %821 = vmatpush.bf16.msrb.mxu3 %v1468_v12 }
  0x34   : > { %586 = vmatpush.bf16.msra.mxu0 %v1451_v13  ;;  %v1467_v13 = vld [vmem:[%s2063_s3 + $0x8] sm:$0xff] }
  0x35   : > { %822 = vmatpush.bf16.msrb.mxu3 %v1467_v13 }
  0x39   : > { %823 = vmatpush.bf16.msrb.mxu3 %v1466_v17 }
  0x8f   : > { %v510_v20 = vpop.permute.xlu0 %509 }
  0x90   : > { %vm511_vm2 = vcmp.eq.s32.totalorder %v1743_v19, %v510_v20  ;;  %v1471_v20 = vld [vmem:[%s2065_s5 + $0x8] sm:$0xff] }
  0x91   : > { %vm1381_vm3 = vmpackc.low %vm511_vm2, %vm511_vm2  ;;  %860 = vmatpush.bf16.msrb.mxu2 %v1471_v20 }
  0x92   : > { %1382 = vmatmul.msk.bf16.vlgmr.msra.gmra.mxu0 %vm1381_vm3, %v1594_v21  ;;  %vm910_vm3 = vcmask 7168  }
  0x97   : > { %v594_v23 = vpop.permute.xlu0 %593 }
 0x10f   : > { %v588_v24 = vpop.f32.mrf.mxu0 }
 0x110   : > { %v597_v25 = vsel %vm2078_vm4, %v588_v24, %v594_v23 }
 0x111   : > { %v598_v26 = vpack.c.bf16 %v597_v25, %v597_v25 }
 0x113   : > { %1399 = vmatmul.msk.bf16.vlgmr.msra.gmra.mxu1 %vm635_vm5, %v598_v26  ;;  %v1470_v26 = vld [vmem:[%s2065_s5] sm:$0xff] }
 0x114   : > { %861 = vmatpush.bf16.msrb.mxu2 %v1470_v26 }
 0x117   : > { %v590_v27 = vpop.f32.mrf.mxu0 }
 0x118   : > { %v1564_v27 = vld [vmem:[%s2064_s4] ss:$0 sm:$0xff] }
 0x190   : > { %v648_v29 = vpop.f32.mrf.mxu1 }
 0x191   : > { %v649_v30 = vadd.f32 %v1563_v28, %v648_v29 }
 0x193   : > { %1566 = vtanh.f32 %v649_v30  ;;  %v1400_v34 = vmul.f32 -1.442695, %v649_v30 }
 0x195   : > { %1568 = vpow2.f32 %v1400_v34 }
 0x198   : > { %v650_v31 = vpop.f32.mrf.mxu1 }
 0x199   : > { %v1567_v32 = vpop.eup %1566 }
 0x19a   : > { %678 = vrot.lane.b32.xlu1 %v1567_v32, %s1595_s27 }
 0x19b   : > { %v1569_v35 = vpop.eup %1568 }
 0x19c   : > { %v655_v36 = vadd.f32 1.0, %v1569_v35 }
 0x19e   : > { %1570 = vrcp.f32 %v655_v36  ;;  %v667_v42 = vand.u32 2147483648, %v655_v36  ;;  %vm661_vm7 = vweird.f32 %v655_v36  ;;  %v665_v43 = vand.u32 2147483647, %v655_v36 }
 0x1a0   : > { %v668_v45 = vor.u32 1.1754944e-38, %v667_v42  ;;  %vm666_vm9 = vcmp.eq.f32.partialorder %v665_v43, 8.507059e+37 }
 0x1a2   : > { %673 = vrot.lane.b32.xlu1 %v500_v33, %s1593_s16  ;;  %v1565_v33 = vld [vmem:[%s2066_s6] ss:$0 sm:$0xff] }
 0x1a4   : > { %v1571_v37 = vpop.eup %1570 }
 0x1a5   : > { %v657_v38 = vmul.f32 %v1571_v37, %v655_v36  ;;  %vm662_vm6 = vweird.f32 %v1571_v37 }
 0x1a6   : > { %vm663_vm8 = vmor %vm661_vm7, %vm662_vm6 }
 0x1a7   : > { %v658_v39 = vsub.f32 1.0, %v657_v38 }
 0x1a9   : > { %v659_v40 = vmul.f32 %v1571_v37, %v658_v39 }
 0x1ab   : > { %v660_v41 = vadd.f32 %v1571_v37, %v659_v40 }
 0x1ad   : > { %v664_v44 = vsel %vm663_vm8, %v1571_v37, %v660_v41  ;;  %v502_v37 = vld [vmem:[#allocation4] sm:$0xff]  ;;  %vm925_vm8 = vcmask 23552  }
 0x1ae   : > { %v669_v47 = vsel %vm666_vm9, %v668_v45, %v664_v44 }
 0x20c   : > { %v679_v46 = vpop.permute.xlu1 %678 }
 0x20d   : > { %v681_v48 = vmul.f32 %v679_v46, %v669_v47 }
 0x20f   : > { %683 = vrot.lane.b32.xlu2 %v681_v48, %s1593_s16 }
 0x214   : > { %v674_v49 = vpop.permute.xlu1 %673 }
 0x215   : > { %v676_v50 = vmul.f32 %v674_v49, %v669_v47 }
 0x269   : > { %v684_v51 = vpop.permute.xlu2 %683 }
 0x26a   : > { %v1757_v52 = vadd.f32 %v684_v51, %v676_v50  ;;  %v1808_v50 = vcvt.s32.f32 %v1743_v19 }
 0x26c   : > { %1572 = vtanh.f32 %v1757_v52 }
 0x272   : > { %v1573_v53 = vpop.eup %1572 }
 0x273   : > { %689 = vrot.lane.b32.xlu2 %v1573_v53, %s1595_s27 }
 0x2cd   : > { %v690_v56 = vpop.permute.xlu2 %689 }
 0x2ce   : > { %v692_v57 = vmul.f32 %v690_v56, %v669_v47 }
 0x2d0   : > { %v693_v58 = vpack.c.bf16 %v692_v57, %v692_v57 }
 0x2d2   : > { %700 = vrot.lane.b32.xlu0 %v693_v58, %s1593_s16 }
 0x344   : > { %v701_v59 = vpop.permute.xlu0 %700 }
 0x345   : > { %1409 = vmatmul.msk.bf16.vlgmr.msra.gmra.mxu2 %vm2078_vm4, %v701_v59 }
 0x3c8   : > { %v726_v61 = vpop.f32.mrf.mxu2 }
 0x3c9   : > { %v727_v62 = vadd.f32 %v726_v61, %v698_v60 }
 0x3cb   : > { %v731_v63 = vsel %vm730_vm10, %v727_v62, -inf }
 0x3cc   : > { %732 = vmax.xlane.f32.xlu1 %v731_v63 }
 0x3d0   : > { %v728_v0 = vpop.f32.mrf.mxu2 }
 0x3e5   : > { %882 = vperm.xlu1 %1562, %v502_v37  }
 0x43f   : > { %v733_v1 = vpop.xlane.xlu1 %732 }
 0x440   : > { %v734_v2 = vsub.f32 %v727_v62, %v733_v1 }
 0x442   : > { %v735_v3 = vmul.f32 1.442695, %v734_v2 }
 0x444   : > { %1574 = vpow2.f32 %v735_v3 }
 0x44a   : > { %v1575_v4 = vpop.eup %1574 }
 0x44b   : > { %v737_v5 = vsel %vm730_vm10, %v1575_v4, 0.0 }
 0x44c   : > { %738 = vadd.xlane.f32.xlu2 %v737_v5 }
 0x457   : > { %v883_v46 = vpop.permute.xlu1 %882 }
 0x4bf   : > { %v739_v7 = vpop.xlane.xlu2 %738 }
 0x4c0   : > { %1576 = vrcp.f32 %v739_v7 }
 0x4c6   : > { %v1577_v8 = vpop.eup %1576 }
 0x4c7   : > { %v741_v9 = vmul.f32 %v1577_v8, %v1575_v4  ;;  %v1828_v4 = vshrl.u32 %v503_v18, 7 }
 0x4c9   : > { %v742_v10 = vpack.c.bf16 %v741_v9, %v741_v9  ;;  %vm1063_vm1 = vcmp.ge.s32.totalorder %v1828_v4, 3  ;;  %vm1064_vm2 = vcmp.lt.s32.totalorder %v1828_v4, 6  ;;  %vm920_vm7 = vcmp.lt.s32.totalorder %v1828_v4, 3 }
 0x4ca   : > { %vm1832_vm6 = vmand %vm1063_vm1, %vm1064_vm2  ;;  %v916_v20 = vmul.u32 4, %v1828_v4  ;;  %vm2077_vm1 = vcmp.eq.s32.totalorder %v1828_v4, 0  ;;  %vm2076_vm2 = vcmp.eq.s32.totalorder %v1828_v4, 1 }
 0x4cb   : > { %1414 = vmatmul.msk.bf16.vlgmr.msra.gmra.mxu3 %vm730_vm10, %v742_v10 }
 0x54e   : > { %v763_v14 = vpop.f32.mrf.mxu3 }
 0x54f   : > { %v1557_v15 = vpack.i.bf16 %v763_v14, %v692_v57 }
 0x551   : > { %1558 = vrot.lane.b32.xlu0 %v1557_v15, %s1593_s16 }
 0x556   : > { %v765_v16 = vpop.f32.mrf.mxu3 }
 0x5c3   : > { %v1559_v21 = vpop.permute.xlu0 %1558 }
 0x5c4   : > { %v1561_v22 = vunpack.i.h.bf16 %v1559_v21  ;;  %v1560_v23 = vunpack.i.l.bf16 %v1559_v21 }
 0x5c6   : > { %v775_v24 = vsel %vm2078_vm4, %v1560_v23, %v1561_v22  ;;  %1234 = vmatpush.msrb.mxu1 %v1560_v23 }
 0x5c7   : > { %v776_v25 = vpack.c.bf16 %v775_v24, %v775_v24 }
 0x5c9   : > { %1431 = vmatmul.msk.bf16.vlgmr.msrb.gmra.mxu3 %vm635_vm5, %v776_v25  ;;  %vm2079_vm5 = vcmask 15360   ;;  %v1850_v25 = vadd.s32 %v916_v20, %v1743_v19 }
 0x64c   : > { %v825_v28 = vpop.f32.mrf.mxu3 }
 0x64d   : > { %v826_v29 = vadd.f32 %v1564_v27, %v825_v28  ;;  %v1853_v28 = vcvt.s32.f32 %v1850_v25 }
 0x64f   : > { %1578 = vtanh.f32 %v826_v29 }
 0x654   : > { %v827_v30 = vpop.f32.mrf.mxu3 }
 0x655   : > { %v1579_v31 = vpop.eup %1578 }
 0x656   : > { %v830_v32 = vpack.c.bf16 %v1579_v31, %v1579_v31 }
 0x658   : > { %1440 = vmatmul.msk.bf16.vlgmr.msrb.gmra.mxu2 %vm2078_vm4, %v830_v32  ;;  %vm1196_vm4 = vcmp.eq.s32.totalorder %v1828_v4, 5 }
 0x6db   : > { %v863_v34 = vpop.f32.mrf.mxu2 }
 0x6dc   : > { %v864_v35 = vadd.f32 %v1565_v33, %v863_v34 }
 0x6de   : > { %867 = vmax.xlane.f32.xlu0 %v864_v35 }
 0x6e3   : > { %v865_v36 = vpop.f32.mrf.mxu2 }
 0x751   : > { %v868_v38 = vpop.xlane.xlu0 %867 }
 0x752   : > { %v869_v39 = vsub.f32 %v864_v35, %v868_v38 }
 0x754   : > { %v870_v40 = vmul.f32 1.442695, %v869_v39 }
 0x756   : > { %1580 = vpow2.f32 %v870_v40 }
 0x75c   : > { %v1581_v41 = vpop.eup %1580 }
 0x75d   : > { %872 = vadd.xlane.f32.xlu2 %v1581_v41 }
 0x7d0   : > { %v873_v42 = vpop.xlane.xlu2 %872 }
 0x7d1   : > { %1582 = vlog2.f32 %v873_v42 }
 0x7d7   : > { %v1583_v43 = vpop.eup %1582 }
 0x7d8   : > { %v875_v44 = vmul.f32 0.6931472, %v1583_v43 }
 0x7da   : > { %v876_v45 = vadd.f32 %v875_v44, %v868_v38 }
 0x7dc   : > { %v877_v47 = vsub.f32 %v864_v35, %v876_v45 }
 0x7de   : > { %v878_v48 = vpack.c.bf16 %v877_v47, %v877_v47  ;;  %v885_v49 = vadd.f32 %v883_v46, %v877_v47 }
 0x7e0   : > { %879 = vst [vmem:[%s1689_s25] sm:$0xf] %v878_v48  ;;  %886 = vmax.xlane.f32.xlu2 %v885_v49  ;;  %s1597_s25 = smov 96  }
 0x853   : > { %v887_v51 = vpop.xlane.xlu2 %886 }
 0x854   : > { %vm888_vm11 = vcmp.ge.f32.partialorder %v885_v49, %v887_v51 }
 0x855   : > { %v889_v53 = vsel %vm888_vm11, %v1808_v50, 129.0 }
 0x856   : > { %890 = vmin.xlane.f32.xlu2 %v889_v53 }
 0x8c9   : > { %v1811_v54 = vpop.xlane.xlu2 %890 }
 0x8ca   : > { %vm1472_vm12 = vcmp.lt.s32.totalorder %v1811_v54, 0  ;;  %v1473_v55 = vceil.f32 %v1811_v54  ;;  %v1474_v56 = vfloor.f32 %v1811_v54 }
 0x8cc   : > { %v1475_v57 = vsel %vm1472_vm12, %v1473_v55, %v1474_v56 }
 0x8cd   : > { %v1476_v58 = vcvt.f32.s32 %v1475_v57 }
 0x8cf   : > { %vm893_vm13 = vcmp.eq.s32.totalorder %v1743_v19, %v1476_v58 }
 0x8d0   : > { %v894_v59 = vsel %vm893_vm13, -inf, %v885_v49 }
 0x8d1   : > { %895 = vmax.xlane.f32.xlu0 %v894_v59 }
 0x944   : > { %v896_v60 = vpop.xlane.xlu0 %895 }
 0x945   : > { %vm897_vm14 = vcmp.ge.f32.partialorder %v894_v59, %v896_v60  ;;  %v911_v6 = vsel %vm910_vm3, %v887_v51, %v896_v60 }
 0x946   : > { %v898_v61 = vsel %vm897_vm14, %v1808_v50, 129.0 }
 0x947   : > { %899 = vmin.xlane.f32.xlu2 %v898_v61 }
 0x9ba   : > { %v1818_v62 = vpop.xlane.xlu2 %899 }
 0x9bb   : > { %vm1477_vm15 = vcmp.lt.s32.totalorder %v1818_v62, 0  ;;  %v1478_v63 = vceil.f32 %v1818_v62  ;;  %v1479_v0 = vfloor.f32 %v1818_v62 }
 0x9bd   : > { %v1480_v1 = vsel %vm1477_vm15, %v1478_v63, %v1479_v0 }
 0x9be   : > { %v1481_v2 = vcvt.f32.s32 %v1480_v1 }
 0x9c0   : > { %vm902_vm0 = vcmp.eq.s32.totalorder %v1743_v19, %v1481_v2 }
 0x9c1   : > { %v1824_v3 = vsel %vm902_vm0, -inf, %v894_v59 }
 0x9c2   : > { %904 = vmax.xlane.f32.xlu0 %v1824_v3 }
 0xa35   : > { %v1838_v7 = vpop.xlane.xlu0 %904 }
 0xa36   : > { %v913_v18 = vsel %vm2079_vm5, %v911_v6, %v1838_v7 }
 0xa37   : > { %v1068_v8 = vsel %vm1832_vm6, %v913_v18, -inf  ;;  %v924_v9 = vsel %vm920_vm7, %v913_v18, -inf }
 0xa38   : > { %v1069_v10 = vsel %vm925_vm8, %v1068_v8, -inf  ;;  %v926_v11 = vsel %vm925_vm8, %v924_v9, -inf }
 0xa39   : > { %1070 = vmax.xlane.f32.xlu2 %v1069_v10  ;;  %927 = vmax.xlane.f32.xlu1 %v926_v11 }
 0xaac   : > { %v1071_v12 = vpop.xlane.xlu2 %1070  ;;  %v928_v13 = vpop.xlane.xlu1 %927 }
 0xaad   : > { %v1072_v14 = vrot.slane %v1071_v12, 4  ;;  %v929_v15 = vrot.slane %v928_v13, 4 }
 0xaaf   : > { %v1073_v16 = vmax.f32 %v1071_v12, %v1072_v14  ;;  %v930_v17 = vmax.f32 %v928_v13, %v929_v15 }
 0xab1   : > { %v1074_v21 = vrot.slane %v1073_v16, 2  ;;  %v931_v22 = vrot.slane %v930_v17, 2 }
 0xab3   : > { %v1075_v23 = vmax.f32 %v1073_v16, %v1074_v21  ;;  %v932_v24 = vmax.f32 %v930_v17, %v931_v22 }
 0xab5   : > { %v1076_v26 = vrot.slane %v1075_v23, 1  ;;  %v933_v27 = vrot.slane %v932_v24, 1 }
 0xab7   : > { %v1855_v29 = vmax.f32 %v1075_v23, %v1076_v26  ;;  %v934_v30 = vmax.f32 %v932_v24, %v933_v27 }
 0xab9   : > { %vm1078_vm9 = vcmp.ge.f32.partialorder %v1068_v8, %v1855_v29  ;;  %vm935_vm10 = vcmp.ge.f32.partialorder %v924_v9, %v934_v30  ;;  %v962_v22 = vsel %vm2077_vm1, %v934_v30, 0.0 }
 0xaba   : > { %vm1079_vm11 = vmand %vm1078_vm9, %vm1832_vm6 }
 0xabb   : > { %v1080_v31 = vsel %vm1079_vm11, %v1853_v28, 33.0  ;;  %vm936_vm12 = vmand %vm935_vm10, %vm920_vm7 }
 0xabc   : > { %v1081_v32 = vsel %vm925_vm8, %v1080_v31, inf  ;;  %v937_v33 = vsel %vm936_vm12, %v1853_v28, 33.0 }
 0xabd   : > { %1082 = vmin.xlane.f32.xlu2 %v1081_v32  ;;  %v938_v34 = vsel %vm925_vm8, %v937_v33, inf }
 0xabe   : > { %939 = vmin.xlane.f32.xlu0 %v938_v34 }
 0xb30   : > { %v1083_v35 = vpop.xlane.xlu2 %1082 }
 0xb31   : > { %v1084_v36 = vrot.slane %v1083_v35, 4  ;;  %v940_v37 = vpop.xlane.xlu0 %939 }
 0xb32   : > { %v941_v38 = vrot.slane %v940_v37, 4 }
 0xb33   : > { %v1085_v39 = vmin.f32 %v1083_v35, %v1084_v36 }
 0xb34   : > { %v942_v40 = vmin.f32 %v940_v37, %v941_v38 }
 0xb35   : > { %v1086_v41 = vrot.slane %v1085_v39, 2 }
 0xb36   : > { %v943_v42 = vrot.slane %v942_v40, 2 }
 0xb37   : > { %v1087_v43 = vmin.f32 %v1085_v39, %v1086_v41 }
 0xb38   : > { %v944_v44 = vmin.f32 %v942_v40, %v943_v42 }
 0xb39   : > { %v1088_v45 = vrot.slane %v1087_v43, 1 }
 0xb3a   : > { %v945_v46 = vrot.slane %v944_v44, 1 }
 0xb3b   : > { %v1089_v47 = vmin.f32 %v1087_v43, %v1088_v45 }
 0xb3c   : > { %v946_v48 = vmin.f32 %v944_v44, %v945_v46 }
 0xb3d   : > { %v1513_v49 = vceil.f32 %v1089_v47  ;;  %v1514_v51 = vfloor.f32 %v1089_v47  ;;  %vm1512_vm13 = vcmp.lt.s32.totalorder %v1089_v47, 0 }
 0xb3e   : > { %v1483_v53 = vceil.f32 %v946_v48  ;;  %v1484_v55 = vfloor.f32 %v946_v48  ;;  %vm1482_vm14 = vcmp.lt.s32.totalorder %v946_v48, 0 }
 0xb3f   : > { %v1866_v56 = vsel %vm1512_vm13, %v1513_v49, %v1514_v51 }
 0xb40   : > { %v1516_v57 = vcvt.f32.s32 %v1866_v56  ;;  %v1485_v58 = vsel %vm1482_vm14, %v1483_v53, %v1484_v55 }
 0xb41   : > { %v1486_v59 = vcvt.f32.s32 %v1485_v58 }
 0xb42   : > { %vm1872_vm15 = vcmp.eq.s32.totalorder %v1850_v25, %v1516_v57 }
 0xb43   : > { %v1878_v61 = vsel %vm1872_vm15, -inf, %v1068_v8  ;;  %vm1881_vm0 = vcmp.eq.s32.totalorder %v1850_v25, %v1486_v59  ;;  %v948_v44 = vshra.s32 %v1486_v59, 2 }
 0xb44   : > { %v1115_v0 = vsel %vm925_vm8, %v1878_v61, -inf  ;;  %v1889_v1 = vsel %vm1881_vm0, -inf, %v924_v9 }
 0xb45   : > { %1116 = vmax.xlane.f32.xlu2 %v1115_v0  ;;  %v972_v2 = vsel %vm925_vm8, %v1889_v1, -inf  ;;  %v1596_v0 = vmov 0.0  }
 0xb46   : > { %973 = vmax.xlane.f32.xlu0 %v972_v2 }
 0xbb8   : > { %v1117_v6 = vpop.xlane.xlu2 %1116 }
 0xbb9   : > { %v1118_v18 = vrot.slane %v1117_v6, 4  ;;  %v974_v8 = vpop.xlane.xlu0 %973 }
 0xbba   : > { %v975_v10 = vrot.slane %v974_v8, 4 }
 0xbbb   : > { %v1119_v11 = vmax.f32 %v1117_v6, %v1118_v18  ;;  %v1091_v18 = vshra.s32 %v1516_v57, 2 }
 0xbbc   : > { %v976_v12 = vmax.f32 %v974_v8, %v975_v10  ;;  %v964_v10 = vsel %vm2077_vm1, %v948_v44, 0 }
 0xbbd   : > { %v1120_v13 = vrot.slane %v1119_v11, 2 }
 0xbbe   : > { %v977_v14 = vrot.slane %v976_v12, 2 }
 0xbbf   : > { %v1121_v15 = vmax.f32 %v1119_v11, %v1120_v13 }
 0xbc0   : > { %v978_v16 = vmax.f32 %v976_v12, %v977_v14 }
 0xbc1   : > { %v1122_v17 = vrot.slane %v1121_v15, 1 }
 0xbc2   : > { %v979_v9 = vrot.slane %v978_v16, 1 }
 0xbc3   : > { %v1894_v20 = vmax.f32 %v1121_v15, %v1122_v17 }
 0xbc4   : > { %v980_v21 = vmax.f32 %v978_v16, %v979_v9 }
 0xbc5   : > { %vm1124_vm9 = vcmp.ge.f32.partialorder %v1878_v61, %v1894_v20 }
 0xbc6   : > { %vm1125_vm10 = vmand %vm1124_vm9, %vm1832_vm6  ;;  %vm981_vm11 = vcmp.ge.f32.partialorder %v1889_v1, %v980_v21  ;;  %v1906_v23 = vsel %vm2076_vm2, %v980_v21, %v962_v22  ;;  %vm965_vm9 = vcmp.eq.s32.totalorder %v1743_v19, %v948_v44 }
 0xbc7   : > { %v1126_v24 = vsel %vm1125_vm10, %v1853_v28, 33.0  ;;  %vm982_vm12 = vmand %vm981_vm11, %vm920_vm7  ;;  %v1441_v2 = vsel %vm965_vm9, 1.0, %v1596_v0 }
 0xbc8   : > { %v1127_v26 = vsel %vm925_vm8, %v1126_v24, inf  ;;  %v983_v27 = vsel %vm982_vm12, %v1853_v28, 33.0  ;;  %v970_v14 = vsel %vm2077_vm1, %v1441_v2, 0.0  ;;  %v914_v2 = vsel %vm910_vm3, %v1811_v54, %v1818_v62 }
 0xbc9   : > { %1128 = vmin.xlane.f32.xlu2 %v1127_v26  ;;  %v984_v30 = vsel %vm925_vm8, %v983_v27, inf }
 0xbca   : > { %985 = vmin.xlane.f32.xlu0 %v984_v30 }
 0xc3c   : > { %v1129_v31 = vpop.xlane.xlu2 %1128 }
 0xc3d   : > { %v1130_v32 = vrot.slane %v1129_v31, 4  ;;  %v986_v33 = vpop.xlane.xlu0 %985 }
 0xc3e   : > { %v987_v34 = vrot.slane %v986_v33, 4 }
 0xc3f   : > { %v1131_v35 = vmin.f32 %v1129_v31, %v1130_v32 }
 0xc40   : > { %v988_v36 = vmin.f32 %v986_v33, %v987_v34 }
 0xc41   : > { %v1132_v37 = vrot.slane %v1131_v35, 2 }
 0xc42   : > { %v989_v38 = vrot.slane %v988_v36, 2 }
 0xc43   : > { %v1133_v39 = vmin.f32 %v1131_v35, %v1132_v37 }
 0xc44   : > { %v990_v40 = vmin.f32 %v988_v36, %v989_v38 }
 0xc45   : > { %v1134_v41 = vrot.slane %v1133_v39, 1 }
 0xc46   : > { %v991_v42 = vrot.slane %v990_v40, 1 }
 0xc47   : > { %v1135_v43 = vmin.f32 %v1133_v39, %v1134_v41 }
 0xc48   : > { %v992_v45 = vmin.f32 %v990_v40, %v991_v42 }
 0xc49   : > { %vm1522_vm13 = vcmp.lt.s32.totalorder %v1135_v43, 0  ;;  %v1523_v46 = vceil.f32 %v1135_v43  ;;  %v1524_v47 = vfloor.f32 %v1135_v43 }
 0xc4a   : > { %vm1492_vm14 = vcmp.lt.s32.totalorder %v992_v45, 0  ;;  %v1493_v48 = vceil.f32 %v992_v45  ;;  %v1494_v49 = vfloor.f32 %v992_v45 }
 0xc4b   : > { %v1914_v51 = vsel %vm1522_vm13, %v1523_v46, %v1524_v47  ;;  %vm1053_vm13 = vcmp.eq.s32.totalorder %v1828_v4, 2 }
 0xc4c   : > { %v1526_v53 = vcvt.f32.s32 %v1914_v51  ;;  %v1495_v55 = vsel %vm1492_vm14, %v1493_v48, %v1494_v49  ;;  %vm1104_vm14 = vcmp.eq.s32.totalorder %v1828_v4, 3 }
 0xc4d   : > { %v1496_v58 = vcvt.f32.s32 %v1495_v55 }
 0xc4e   : > { %vm1921_vm10 = vcmp.eq.s32.totalorder %v1850_v25, %v1526_v53 }
 0xc4f   : > { %v1160_v6 = vsel %vm1921_vm10, -inf, %v1878_v61  ;;  %vm1930_vm11 = vcmp.eq.s32.totalorder %v1850_v25, %v1496_v58  ;;  %v994_v8 = vshra.s32 %v1496_v58, 2 }
 0xc50   : > { %v1161_v11 = vsel %vm925_vm8, %v1160_v6, -inf  ;;  %v1017_v12 = vsel %vm1930_vm11, -inf, %v1889_v1 }
 0xc51   : > { %1162 = vmax.xlane.f32.xlu2 %v1161_v11  ;;  %v1018_v13 = vsel %vm925_vm8, %v1017_v12, -inf  ;;  %v1943_v61 = vsel %vm2076_vm2, %v994_v8, %v964_v10  ;;  %vm1011_vm12 = vcmp.eq.s32.totalorder %v1743_v19, %v994_v8 }
 0xc52   : > { %1019 = vmax.xlane.f32.xlu0 %v1018_v13  ;;  %v1442_v15 = vsel %vm1011_vm12, 1.0, %v1596_v0  ;;  %vm1150_vm12 = vcmp.eq.s32.totalorder %v1828_v4, 4 }
 0xc53   : > { %v1951_v16 = vsel %vm2076_vm2, %v1442_v15, %v970_v14 }
 0xc69   : > { %1241 = vrot.lane.b32.xlu2 %v1757_v52, %s1597_s25 }
 0xcc4   : > { %v1163_v1 = vpop.xlane.xlu2 %1162 }
 0xcc5   : > { %v1164_v17 = vrot.slane %v1163_v1, 4  ;;  %v1020_v9 = vpop.xlane.xlu0 %1019 }
 0xcc6   : > { %v1021_v21 = vrot.slane %v1020_v9, 4 }
 0xcc7   : > { %v1165_v22 = vmax.f32 %v1163_v1, %v1164_v17  ;;  %v1137_v17 = vshra.s32 %v1526_v53, 2 }
 0xcc8   : > { %v1022_v24 = vmax.f32 %v1020_v9, %v1021_v21 }
 0xcc9   : > { %v1166_v26 = vrot.slane %v1165_v22, 2 }
 0xcca   : > { %v1023_v27 = vrot.slane %v1022_v24, 2 }
 0xccb   : > { %v1167_v30 = vmax.f32 %v1165_v22, %v1166_v26 }
 0xccc   : > { %v1024_v31 = vmax.f32 %v1022_v24, %v1023_v27  ;;  %v1242_v32 = vpop.permute.xlu2 %1241 }
 0xccd   : > { %v1168_v33 = vrot.slane %v1167_v30, 1  ;;  %1259 = vmatpush.msra.mxu3 %v1242_v32 }
 0xcce   : > { %v1025_v34 = vrot.slane %v1024_v31, 1 }
 0xccf   : > { %v1169_v35 = vmax.f32 %v1167_v30, %v1168_v33 }
 0xcd0   : > { %v1026_v36 = vmax.f32 %v1024_v31, %v1025_v34 }
 0xcd1   : > { %vm1170_vm9 = vcmp.ge.f32.partialorder %v1160_v6, %v1169_v35 }
 0xcd2   : > { %vm1171_vm2 = vmand %vm1170_vm9, %vm1832_vm6  ;;  %vm1027_vm1 = vcmp.ge.f32.partialorder %v1017_v12, %v1026_v36  ;;  %v1054_v52 = vsel %vm1053_vm13, %v1026_v36, %v1906_v23  ;;  %vm906_vm6 = vcmp.ge.f32.partialorder %v1824_v3, %v1838_v7  ;;  %vm1154_vm9 = vcmp.eq.s32.totalorder %v1743_v19, %v1137_v17 }
 0xcd3   : > { %v1172_v37 = vsel %vm1171_vm2, %v1853_v28, 33.0  ;;  %vm1028_vm5 = vmand %vm1027_vm1, %vm920_vm7  ;;  %v1105_v38 = vsel %vm1104_vm14, %v1855_v29, %v1054_v52  ;;  %v907_v29 = vsel %vm906_vm6, %v1808_v50, 129.0  ;;  %v1445_v33 = vsel %vm1154_vm9, 1.0, %v1596_v0 }
 0xcd4   : > { %v1173_v39 = vsel %vm925_vm8, %v1172_v37, inf  ;;  %v1029_v5 = vsel %vm1028_vm5, %v1853_v28, 33.0  ;;  %v1151_v40 = vsel %vm1150_vm12, %v1894_v20, %v1105_v38  ;;  %vm2090_vm5 = vcmask 15360  }
 0xcd5   : > { %1174 = vmin.xlane.f32.xlu1 %v1173_v39  ;;  %v1030_v23 = vsel %vm925_vm8, %v1029_v5, inf  ;;  %v1977_v41 = vsel %vm1196_vm4, %v1169_v35, %v1151_v40 }
 0xcd6   : > { %1031 = vmin.xlane.f32.xlu0 %v1030_v23 }
 0xcde   : > { %908 = vmin.xlane.f32.xlu0 %v907_v29 }
 0xd48   : > { %v1175_v42 = vpop.xlane.xlu1 %1174 }
 0xd49   : > { %v1032_v28 = vpop.xlane.xlu0 %1031  ;;  %v1176_v43 = vrot.slane %v1175_v42, 4 }
 0xd4a   : > { %v1033_v44 = vrot.slane %v1032_v28, 4 }
 0xd4b   : > { %v1177_v45 = vmin.f32 %v1175_v42, %v1176_v43 }
 0xd4c   : > { %v1034_v20 = vmin.f32 %v1032_v28, %v1033_v44 }
 0xd4d   : > { %v1178_v46 = vrot.slane %v1177_v45, 2 }
 0xd4e   : > { %v1035_v47 = vrot.slane %v1034_v20, 2 }
 0xd4f   : > { %v1179_v48 = vmin.f32 %v1177_v45, %v1178_v46 }
 0xd50   : > { %v1036_v49 = vmin.f32 %v1034_v20, %v1035_v47 }
 0xd51   : > { %v1180_v55 = vrot.slane %v1179_v48, 1  ;;  %v909_v58 = vpop.xlane.xlu0 %908 }
 0xd52   : > { %v1037_v3 = vrot.slane %v1036_v49, 1  ;;  %v915_v50 = vsel %vm2090_vm5, %v914_v2, %v909_v58  ;;  %vm1215_vm5 = vcmask 64512  }
 0xd53   : > { %v1181_v7 = vmin.f32 %v1179_v48, %v1180_v55  ;;  %v996_v6 = vsel %vm1930_vm11, %v915_v50, 0.0  ;;  %v950_v8 = vsel %vm1881_vm0, %v915_v50, 0.0  ;;  %v1093_v9 = vsel %vm1872_vm15, %v915_v50, 0.0 }
 0xd54   : > { %v1038_v10 = vmin.f32 %v1036_v49, %v1037_v3  ;;  %v997_v11 = vsel %vm925_vm8, %v996_v6, 0.0  ;;  %v951_v12 = vsel %vm925_vm8, %v950_v8, 0.0  ;;  %vm1108_vm11 = vcmp.eq.s32.totalorder %v1743_v19, %v1091_v18 }
 0xd55   : > { %998 = vadd.xlane.f32.xlu0 %v997_v11  ;;  %952 = vadd.xlane.f32.xlu1 %v951_v12  ;;  %vm1532_vm7 = vcmp.lt.s32.totalorder %v1181_v7, 0  ;;  %v1533_v13 = vceil.f32 %v1181_v7  ;;  %v1534_v54 = vfloor.f32 %v1181_v7  ;;  %v1094_v56 = vsel %vm925_vm8, %v1093_v9, 0.0 }
 0xd56   : > { %vm1502_vm1 = vcmp.lt.s32.totalorder %v1038_v10, 0  ;;  %v1503_v62 = vceil.f32 %v1038_v10  ;;  %v1504_v14 = vfloor.f32 %v1038_v10  ;;  %v1444_v31 = vsel %vm1108_vm11, 1.0, %v1596_v0 }
 0xd57   : > { %v1535_v15 = vsel %vm1532_vm7, %v1533_v13, %v1534_v54  ;;  %v1139_v52 = vsel %vm1921_vm10, %v915_v50, 0.0 }
 0xd58   : > { %v1536_v1 = vcvt.f32.s32 %v1535_v15  ;;  %v1505_v63 = vsel %vm1502_vm1, %v1503_v62, %v1504_v14  ;;  %v1140_v37 = vsel %vm925_vm8, %v1139_v52, 0.0  ;;  %vm2091_vm1 = vcmask 261120  }
 0xd59   : > { %v1506_v21 = vcvt.f32.s32 %v1505_v63  ;;  %vm2093_vm9 = vmmov %vm2091_vm1 }
 0xd5a   : > { %v1183_v22 = vshra.s32 %v1536_v1, 2  ;;  %vm1184_vm0 = vcmp.eq.s32.totalorder %v1850_v25, %v1536_v1 }
 0xd5b   : > { %v1185_v24 = vsel %vm1184_vm0, %v915_v50, 0.0  ;;  %v1040_v26 = vshra.s32 %v1506_v21, 2  ;;  %vm1041_vm2 = vcmp.eq.s32.totalorder %v1850_v25, %v1506_v21 }
 0xd5c   : > { %v1186_v57 = vsel %vm925_vm8, %v1185_v24, 0.0  ;;  %v1042_v27 = vsel %vm1041_vm2, %v915_v50, 0.0  ;;  %vm1200_vm6 = vcmp.eq.s32.totalorder %v1743_v19, %v1183_v22  ;;  %vm2092_vm2 = vcmp.eq.s32.totalorder %v1828_v4, 0 }
 0xd5d   : > { %1095 = vadd.xlane.f32.xlu0 %v1094_v56  ;;  %1187 = vadd.xlane.f32.xlu2 %v1186_v57  ;;  %v1043_v60 = vsel %vm925_vm8, %v1042_v27, 0.0  ;;  %v1056_v51 = vsel %vm1053_vm13, %v1040_v26, %v1943_v61  ;;  %vm1057_vm15 = vcmp.eq.s32.totalorder %v1743_v19, %v1040_v26 }
 0xd5e   : > { %v1443_v25 = vsel %vm1057_vm15, 1.0, %v1596_v0  ;;  %1044 = vadd.xlane.f32.xlu1 %v1043_v60  ;;  %v1107_v53 = vsel %vm1104_vm14, %v1091_v18, %v1056_v51  ;;  %vm2094_vm15 = vcmp.eq.s32.totalorder %v1828_v4, 1 }
 0xd5f   : > { %v1062_v30 = vsel %vm1053_vm13, %v1443_v25, %v1951_v16  ;;  %v1153_v32 = vsel %vm1150_vm12, %v1137_v17, %v1107_v53  ;;  %v1446_v16 = vsel %vm1200_vm6, 1.0, %v1596_v0 }
 0xd60   : > { %v1113_v61 = vsel %vm1104_vm14, %v1444_v31, %v1062_v30  ;;  %v2024_v34 = vsel %vm1196_vm4, %v1183_v22, %v1153_v32 }
 0xd61   : > { %v1159_v35 = vsel %vm1150_vm12, %v1445_v33, %v1113_v61 }
 0xd62   : > { %v1205_v36 = vsel %vm1196_vm4, %v1446_v16, %v1159_v35 }
 0xd63   : > { %1447 = vmatmul.msk.f32.vlgmr.msrb.gmra.mxu1 %vm1215_vm5, %v1205_v36  ;;  %1448 = vmatmul.msk.f32.vlgmr.msra.gmra.mxu3 %vm1215_vm5, %v1205_v36  ;;  %vm1210_vm5 = vcmp.eq.s32.totalorder %v1743_v19, 2 }
 0xd66   : > { %1141 = vadd.xlane.f32.xlu1 %v1140_v37 }
 0xdc8   : > { %v999_v38 = vpop.xlane.xlu0 %998  ;;  %v953_v39 = vpop.xlane.xlu1 %952 }
 0xdc9   : > { %v1000_v5 = vrot.slane %v999_v38, 4  ;;  %v954_v40 = vrot.slane %v953_v39, 4 }
 0xdcb   : > { %v1001_v23 = vadd.f32 %v1000_v5, %v999_v38  ;;  %v955_v29 = vadd.f32 %v954_v40, %v953_v39 }
 0xdcd   : > { %v1002_v42 = vrot.slane %v1001_v23, 2  ;;  %v956_v28 = vrot.slane %v955_v29, 2 }
 0xdcf   : > { %v957_v0 = vadd.f32 %v956_v28, %v955_v29  ;;  %v1003_v45 = vadd.f32 %v1002_v42, %v1001_v23 }
 0xdd0   : > { %v1096_v43 = vpop.xlane.xlu0 %1095  ;;  %v1188_v44 = vpop.xlane.xlu2 %1187 }
 0xdd1   : > { %v1097_v20 = vrot.slane %v1096_v43, 4  ;;  %v1189_v59 = vrot.slane %v1188_v44, 4  ;;  %v1045_v46 = vpop.xlane.xlu1 %1044  ;;  %v958_v47 = vrot.slane %v957_v0, 1  ;;  %v1004_v2 = vrot.slane %v1003_v45, 1 }
 0xdd2   : > { %v1046_v48 = vrot.slane %v1045_v46, 4 }
 0xdd3   : > { %v1098_v49 = vadd.f32 %v1097_v20, %v1096_v43  ;;  %v1190_v55 = vadd.f32 %v1189_v59, %v1188_v44  ;;  %v959_v3 = vadd.f32 %v958_v47, %v957_v0  ;;  %v1005_v10 = vadd.f32 %v1004_v2, %v1003_v45 }
 0xdd4   : > { %v1047_v58 = vadd.f32 %v1046_v48, %v1045_v46  ;;  %v1207_v47 = vcvt.s32.f32 %v2024_v34  ;;  %v1211_v48 = vsel %vm1210_vm5, %v1977_v41, 0.0 }
 0xdd5   : > { %v1099_v50 = vrot.slane %v1098_v49, 2  ;;  %v1191_v7 = vrot.slane %v1190_v55, 2  ;;  %v1488_v54 = vceil.f32 %v959_v3  ;;  %v1489_v62 = vfloor.f32 %v959_v3 }
 0xdd6   : > { %v1048_v6 = vrot.slane %v1047_v58, 2  ;;  %vm1487_vm8 = vcmp.lt.s32.totalorder %v959_v3, 0  ;;  %v1498_v63 = vceil.f32 %v1005_v10  ;;  %v1499_v17 = vfloor.f32 %v1005_v10 }
 0xdd7   : > { %v1100_v8 = vadd.f32 %v1099_v50, %v1098_v49  ;;  %v1192_v11 = vadd.f32 %v1191_v7, %v1190_v55  ;;  %vm1497_vm10 = vcmp.lt.s32.totalorder %v1005_v10, 0  ;;  %v1490_v22 = vsel %vm1487_vm8, %v1488_v54, %v1489_v62 }
 0xdd8   : > { %v1049_v12 = vadd.f32 %v1048_v6, %v1047_v58  ;;  %v1500_v60 = vsel %vm1497_vm10, %v1498_v63, %v1499_v17  ;;  %v1491_v51 = vcvt.f32.s32 %v1490_v22  ;;  %vm1208_vm8 = vcmp.eq.s32.totalorder %v1743_v19, 1 }
 0xdd9   : > { %v1142_v13 = vpop.xlane.xlu1 %1141  ;;  %v1101_v15 = vrot.slane %v1100_v8, 1  ;;  %v1193_v9 = vrot.slane %v1192_v11, 1  ;;  %v1501_v61 = vcvt.f32.s32 %v1500_v60 }
 0xdda   : > { %v1143_v14 = vrot.slane %v1142_v13, 4  ;;  %v1050_v18 = vrot.slane %v1049_v12, 1  ;;  %v963_v35 = vsel %vm2092_vm2, %v1491_v51, 0 }
 0xddb   : > { %v1102_v24 = vadd.f32 %v1101_v15, %v1100_v8  ;;  %v1194_v25 = vadd.f32 %v1193_v9, %v1192_v11  ;;  %v1009_v5 = vsel %vm2094_vm15, %v1501_v61, %v963_v35 }
 0xddc   : > { %v1144_v1 = vadd.f32 %v1143_v14, %v1142_v13  ;;  %v1051_v21 = vadd.f32 %v1050_v18, %v1049_v12 }
 0xddd   : > { %v1518_v31 = vceil.f32 %v1102_v24  ;;  %v1519_v32 = vfloor.f32 %v1102_v24  ;;  %vm1517_vm0 = vcmp.lt.s32.totalorder %v1102_v24, 0  ;;  %v1538_v16 = vceil.f32 %v1194_v25 }
 0xdde   : > { %vm1507_vm7 = vcmp.lt.s32.totalorder %v1051_v21, 0  ;;  %v1508_v26 = vceil.f32 %v1051_v21  ;;  %v1509_v56 = vfloor.f32 %v1051_v21  ;;  %v1145_v57 = vrot.slane %v1144_v1, 2 }
 0xddf   : > { %v1539_v36 = vfloor.f32 %v1194_v25  ;;  %vm1537_vm11 = vcmp.lt.s32.totalorder %v1194_v25, 0  ;;  %v1520_v39 = vsel %vm1517_vm0, %v1518_v31, %v1519_v32 }
 0xde0   : > { %v1236_v27 = vpop.f32.mrf.mxu1  ;;  %v1510_v53 = vsel %vm1507_vm7, %v1508_v26, %v1509_v56  ;;  %v1146_v30 = vadd.f32 %v1145_v57, %v1144_v1  ;;  %v1521_v28 = vcvt.f32.s32 %v1520_v39 }
 0xde1   : > { %1239 = vst.msk [vmem:[#allocation2] sm:$0xff] %vm2091_vm1, %v1236_v27  ;;  %v1511_v52 = vcvt.f32.s32 %v1510_v53  ;;  %v1540_v29 = vsel %vm1537_vm11, %v1538_v16, %v1539_v36 }
 0xde2   : > { %v1147_v33 = vrot.slane %v1146_v30, 1  ;;  %v1541_v44 = vcvt.f32.s32 %v1540_v29 }
 0xde3   : > { %v1055_v42 = vsel %vm1053_vm13, %v1511_v52, %v1009_v5  ;;  %vm1206_vm13 = vcmp.eq.s32.totalorder %v1743_v19, 0 }
 0xde4   : > { %v1148_v37 = vadd.f32 %v1147_v33, %v1146_v30  ;;  %v1106_v45 = vsel %vm1104_vm14, %v1521_v28, %v1055_v42 }
 0xde6   : > { %v1261_v38 = vpop.f32.mrf.mxu3  ;;  %vm1527_vm6 = vcmp.lt.s32.totalorder %v1148_v37, 0  ;;  %v1528_v40 = vceil.f32 %v1148_v37  ;;  %v1529_v23 = vfloor.f32 %v1148_v37 }
 0xde7   : > { %1264 = vst.msk [vmem:[#allocation3] sm:$0xff] %vm2093_vm9, %v1261_v38 }
 0xde8   : > { %v1530_v0 = vsel %vm1527_vm6, %v1528_v40, %v1529_v23 }
 0xde9   : > { %v1531_v43 = vcvt.f32.s32 %v1530_v0 }
 0xdeb   : > { %v1152_v20 = vsel %vm1150_vm12, %v1531_v43, %v1106_v45 }
 0xdec   : > { %v1198_v59 = vsel %vm1196_vm4, %v1541_v44, %v1152_v20 }
 0xded   : > { %v1209_v46 = vcvt.s32.f32 %v1198_v59  ;;  %1265 = vst.msk [vmem:[#allocation5] sm:$0xff] %vm910_vm3, %v1198_v59  ;;  %vm1266_vm10 = vcmp.eq.s32.totalorder %v1198_v59, 2 }
 0xdee   : > { %v1267_v49 = vsel %vm1266_vm10, -inf, %v1977_v41 }
 0xdef   : > { %v1212_v55 = vsel %vm1208_vm8, %v1209_v46, %v1211_v48  ;;  %1268 = vst.msk [vmem:[#allocation4] sm:$0xff] %vm910_vm3, %v1267_v49 }
 0xdf0   : > { %v1213_v58 = vsel %vm1206_vm13, %v1207_v47, %v1212_v55 }
 0xdf1   : > { %1214 = vst [vmem:[%s1694_s28] sm:$0xff] %v1213_v58 }
 0xdf2 PF: > { %s26_s18 = sadd.s32 1, %s1590_s18  }
 0xdf3   : > { %p23_p5 = scmp.ge.s32.totalorder %s26_s18, 10  }
 0xdf5   :  { %25 = sbr.rel (!%p23_p5) target bundleno = 1 (0x1), region = 119 }

</bundles_post_ra>
